<compile_context>
chip_gen: v5e
topology: v5e:2x2
jax: 0.10.0
libtpu: 0.0.40
codegen_flags: <defaults>
</compile_context>

<pallas_src>
import functools
import random

import numpy as np
import jax
import jax.numpy as jnp
from jax.experimental import pallas as pl
from jax.experimental.pallas import tpu as pltpu

KH, KW = 5, 5
PAD = KH // 2          # origin = [2, 2]
MAX_VAL = 1e4          # kornia default max_val (geodesic border)
LANE = 128


# --------------------------------------------------------------------------
# Kernel
# --------------------------------------------------------------------------
def _morph_kernel(x_ref, o_ref, sp_ref, *, passes):
    """Fused 1- or 2-pass 5x5 morphology.

    x_ref / o_ref : (H, W, L)   lane-dense image slab (L images on the lane dim)
    sp_ref        : (H+4, W+4, L) VMEM scratch holding the geodesic-padded data
    passes        : static tuple of (is_max, pad_val, offsets) where offsets is
                    None (flat structuring element -> separable path) or a 5x5
                    tuple of Python-float constants (general path).
    """
    H, W = o_ref.shape[0], o_ref.shape[1]
    cdt = sp_ref.dtype
    cur = x_ref[...].astype(cdt)

    for is_max, pad_val, offsets in passes:
        red = jnp.maximum if is_max else jnp.minimum

        # Rebuild the geodesic border and drop the current data in the centre.
        sp_ref[...] = jnp.full(sp_ref.shape, pad_val, dtype=cdt)
        sp_ref[PAD:PAD + H, PAD:PAD + W, :] = cur

        if offsets is None:
            # Flat structuring element: separable 5x5 (10 taps, no adds).
            # Vertical pass slides over the leading dim (free), keeping the
            # padded columns so the horizontal pass sees the border too.
            v = sp_ref[0:H, :, :]
            for di in range(1, KH):
                v = red(v, sp_ref[di:di + H, :, :])
            # Horizontal pass slides over the sublane dim (lane dim untouched).
            cur = v[:, 0:W, :]
            for dj in range(1, KW):
                cur = red(cur, v[:, dj:dj + W, :])
        else:
            # General structuring element: 25 taps with baked-in constants.
            acc = None
            for i in range(KH):
                for j in range(KW):
                    win = sp_ref[i:i + H, j:j + W, :]
                    off = offsets[i][j]
                    if off != 0.0:
                        win = win + off
                    acc = win if acc is None else red(acc, win)
            cur = acc

    o_ref[...] = cur.astype(o_ref.dtype)


# --------------------------------------------------------------------------
# Wrapper
# --------------------------------------------------------------------------
def _lane_tile_for(bc, h, w):
    """Images per grid step (multiple of 128): ~2 MiB blocks, keep >=2 steps."""
    per_128 = h * w * 128 * 4
    mult = max(1, min(8, (2 * 1024 * 1024) // max(per_128, 1)))
    while mult > 1 and -(-bc // (128 * mult)) < 2:
        mult //= 2
    return 128 * mult


def _neighborhood_np(kernel):
    k = np.asarray(kernel, dtype=np.float32)
    return np.where(k == 0, -MAX_VAL, 0.0).astype(np.float32)


def _passes_for(ops, kernel):
    """Build the static pass configuration from the concrete 5x5 kernel."""
    k_np = np.asarray(kernel)
    nb = _neighborhood_np(kernel)
    flat = bool((k_np != 0).all())      # randn(5,5) -> always True
    passes = []
    for op in ops:
        if op == "dil":
            offs = None if flat else tuple(tuple(float(v) for v in row)
                                           for row in nb[::-1, ::-1])
            passes.append((True, -MAX_VAL, offs))
        else:  # "ero"
            offs = None if flat else tuple(tuple(float(-v) for v in row)
                                           for row in nb)
            passes.append((False, MAX_VAL, offs))
    return tuple(passes)


def _morph(x, kernel, ops):
    """Apply a (possibly fused) sequence of morphology ops with one pallas_call."""
    B, C, H, W = x.shape
    BC = B * C
    passes = _passes_for(ops, kernel)
    flat = all(p[2] is None for p in passes)
    compute_dtype = x.dtype if flat else jnp.float32

    lane_tile = _lane_tile_for(BC, H, W)
    BCp = -(-BC // lane_tile) * lane_tile

    # Lane-dense re-layout: (B, C, H, W) -> (H, W, BCp).  The padded lanes carry
    # zeros; morphology is per-lane so they are simply sliced off afterwards.
    xl = jnp.transpose(x.reshape(BC, H, W), (1, 2, 0))
    if BCp != BC:
        xl = jnp.pad(xl, ((0, 0), (0, 0), (0, BCp - BC)))

    Hp, Wp = H + 2 * PAD, W + 2 * PAD
    itemsize = jnp.dtype(compute_dtype).itemsize
    need = lane_tile * (4 * H * W + Hp * Wp) * max(itemsize, jnp.dtype(x.dtype).itemsize)
    vmem_limit = int(min(max(2 * need, 32 * 1024 * 1024), 56 * 1024 * 1024))

    # TODO(synk): add overlapping spatial (H) tiling with a 2-row halo for very
    # large images; the current design keeps the full HxW plane in one block.
    y = pl.pallas_call(
        functools.partial(_morph_kernel, passes=passes),
        out_shape=jax.ShapeDtypeStruct((H, W, BCp), x.dtype),
        grid=(BCp // lane_tile,),
        in_specs=[pl.BlockSpec((H, W, lane_tile), lambda b: (0, 0, b))],
        out_specs=pl.BlockSpec((H, W, lane_tile), lambda b: (0, 0, b)),
        scratch_shapes=[pltpu.VMEM((Hp, Wp, lane_tile), compute_dtype)],
        compiler_params=pltpu.CompilerParams(
            dimension_semantics=("parallel",),
            vmem_limit_bytes=vmem_limit),
    )(xl)

    return jnp.transpose(y[:, :, :BC], (2, 0, 1)).reshape(B, C, H, W)


def dilation(x, kernel):
    return _morph(x, kernel, ("dil",))


def erosion(x, kernel):
    return _morph(x, kernel, ("ero",))


def closing(x, kernel):
    # Fused erosion(dilation(x)) — single pallas_call, one HBM round trip.
    return _morph(x, kernel, ("dil", "ero"))


def opening(x, kernel):
    # Fused dilation(erosion(x)) — single pallas_call, one HBM round trip.
    return _morph(x, kernel, ("ero", "dil"))


class DataAugmentation:
    """JAX/Pallas port of the Kornia-based DataAugmentation module."""

    def __init__(self, key):
        # torch.randn(5, 5) equivalent, deterministic
        self.kernel = jax.random.normal(key, (KH, KW), dtype=jnp.float32)
        self.transforms = [dilation, erosion, closing, opening]

    def __call__(self, x):
        # Host-side random transform choice, matching the PyTorch module.
        t = random.choice(self.transforms)
        return t(x, self.kernel)


# --------------------------------------------------------------------------
# Pure-JAX references for sanity checks
# --------------------------------------------------------------------------
def _ref_dilation(x, kernel):
    B, C, H, W = x.shape
    nb = jnp.where(kernel == 0, -MAX_VAL, 0.0)[::-1, ::-1]
    xp = jnp.pad(x, ((0, 0), (0, 0), (PAD, PAD), (PAD, PAD)),
                 constant_values=-MAX_VAL)
    vals = jnp.stack([xp[:, :, i:i + H, j:j + W] + nb[i, j]
                      for i in range(KH) for j in range(KW)], 0)
    return jnp.max(vals, axis=0)


def _ref_erosion(x, kernel):
    B, C, H, W = x.shape
    nb = jnp.where(kernel == 0, -MAX_VAL, 0.0)
    xp = jnp.pad(x, ((0, 0), (0, 0), (PAD, PAD), (PAD, PAD)),
                 constant_values=MAX_VAL)
    vals = jnp.stack([xp[:, :, i:i + H, j:j + W] - nb[i, j]
                      for i in range(KH) for j in range(KW)], 0)
    return jnp.min(vals, axis=0)


def _ref_closing(x, kernel):
    return _ref_erosion(_ref_dilation(x, kernel), kernel)


def _ref_opening(x, kernel):
    return _ref_dilation(_ref_erosion(x, kernel), kernel)


if __name__ == "__main__":
    random.seed(0)
    key = jax.random.PRNGKey(0)
    k_kernel, k_x = jax.random.split(key)

    aug = DataAugmentation(k_kernel)
    x = jax.random.uniform(k_x, (2, 4, 16, 16), dtype=jnp.float32)

    # Run the randomly chosen transform once (like the module's forward).
    y = jax.block_until_ready(aug(x))
    assert y.shape == x.shape and y.dtype == x.dtype

    # Check all four fused ops (flat / separable path) against pure-JAX refs.
    checks = [(dilation, _ref_dilation), (erosion, _ref_erosion),
              (closing, _ref_closing), (opening, _ref_opening)]
    for fn, ref in checks:
        out = jax.block_until_ready(fn(x, aug.kernel))
        assert jnp.allclose(out, ref(x, aug.kernel), atol=1e-5), fn.__name__

    # Exercise the general (non-flat structuring element) 25-tap path too.
    k2 = aug.kernel.at[0, 0].set(0.0)
    out = jax.block_until_ready(dilation(x, k2))
    assert jnp.allclose(out, _ref_dilation(x, k2), atol=1e-5)
    out = jax.block_until_ready(closing(x, k2))
    assert jnp.allclose(out, _ref_closing(x, k2), atol=1e-5)

    print("KERNEL_OK")
</pallas_src>

<mosaic_0001>
module attributes {stable_mosaic.version = 11 : i64} {
  func.func @_morph_kernel(%arg0: i32, %arg1: memref<16x16x128xf32, #tpu.memory_space<vmem>>, %arg2: memref<16x16x128xf32, #tpu.memory_space<vmem>>, %arg3: memref<20x20x128xf32, #tpu.memory_space<vmem>>) attributes {dimension_semantics = [#tpu.dimension_semantics<parallel>], iteration_bounds = array<i64: 1>, scalar_prefetch = 0 : i64, scratch_operands = 1 : i64, tpu.core_type = #tpu.core_type<tc>, window_params = [{transform_indices = @transform_0, window_bounds = array<i64: 16, 16, 128>}, {transform_indices = @transform_1, window_bounds = array<i64: 16, 16, 128>}]} {
    %c0 = arith.constant 0 : index
    %c0_0 = arith.constant 0 : index
    %c0_1 = arith.constant 0 : index
    %0 = vector.load %arg1[%c0, %c0_0, %c0_1] : memref<16x16x128xf32, #tpu.memory_space<vmem>>, vector<16x16x128xf32>
    %cst = arith.constant 1.000000e+04 : f32
    %1 = vector.broadcast %cst : f32 to vector<20x20x128xf32>
    %c0_2 = arith.constant 0 : index
    %c0_3 = arith.constant 0 : index
    %c0_4 = arith.constant 0 : index
    %2 = vector.load %arg3[%c0_2, %c0_3, %c0_4] : memref<20x20x128xf32, #tpu.memory_space<vmem>>, vector<20x20x128xf32>
    tpu.vector_store %arg3[%c0_2, %c0_3, %c0_4], %1 {strides = array<i32>} : memref<20x20x128xf32, #tpu.memory_space<vmem>>, vector<20x20x128xf32>,
    %c2 = arith.constant 2 : index
    %c2_5 = arith.constant 2 : index
    %c0_6 = arith.constant 0 : index
    %3 = vector.load %arg3[%c2, %c2_5, %c0_6] : memref<20x20x128xf32, #tpu.memory_space<vmem>>, vector<16x16x128xf32>
    tpu.vector_store %arg3[%c2, %c2_5, %c0_6], %0 {strides = array<i32>} : memref<20x20x128xf32, #tpu.memory_space<vmem>>, vector<16x16x128xf32>,
    %c0_7 = arith.constant 0 : index
    %c0_8 = arith.constant 0 : index
    %c0_9 = arith.constant 0 : index
    %4 = vector.load %arg3[%c0_7, %c0_8, %c0_9] : memref<20x20x128xf32, #tpu.memory_space<vmem>>, vector<16x20x128xf32>
    %c1 = arith.constant 1 : index
    %c0_10 = arith.constant 0 : index
    %c0_11 = arith.constant 0 : index
    %5 = vector.load %arg3[%c1, %c0_10, %c0_11] : memref<20x20x128xf32, #tpu.memory_space<vmem>>, vector<16x20x128xf32>
    %6 = arith.minimumf %4, %5 : vector<16x20x128xf32>
    %c2_12 = arith.constant 2 : index
    %c0_13 = arith.constant 0 : index
    %c0_14 = arith.constant 0 : index
    %7 = vector.load %arg3[%c2_12, %c0_13, %c0_14] : memref<20x20x128xf32, #tpu.memory_space<vmem>>, vector<16x20x128xf32>
    %8 = arith.minimumf %6, %7 : vector<16x20x128xf32>
    %c3 = arith.constant 3 : index
    %c0_15 = arith.constant 0 : index
    %c0_16 = arith.constant 0 : index
    %9 = vector.load %arg3[%c3, %c0_15, %c0_16] : memref<20x20x128xf32, #tpu.memory_space<vmem>>, vector<16x20x128xf32>
    %10 = arith.minimumf %8, %9 : vector<16x20x128xf32>
    %c4 = arith.constant 4 : index
    %c0_17 = arith.constant 0 : index
    %c0_18 = arith.constant 0 : index
    %11 = vector.load %arg3[%c4, %c0_17, %c0_18] : memref<20x20x128xf32, #tpu.memory_space<vmem>>, vector<16x20x128xf32>
    %12 = arith.minimumf %10, %11 : vector<16x20x128xf32>
    %13 = vector.extract_strided_slice %12 {offsets = [0, 0, 0], sizes = [16, 16, 128], strides = [1, 1, 1]} : vector<16x20x128xf32> to vector<16x16x128xf32>
    %14 = vector.extract_strided_slice %12 {offsets = [0, 1, 0], sizes = [16, 16, 128], strides = [1, 1, 1]} : vector<16x20x128xf32> to vector<16x16x128xf32>
    %15 = arith.minimumf %13, %14 : vector<16x16x128xf32>
    %16 = vector.extract_strided_slice %12 {offsets = [0, 2, 0], sizes = [16, 16, 128], strides = [1, 1, 1]} : vector<16x20x128xf32> to vector<16x16x128xf32>
    %17 = arith.minimumf %15, %16 : vector<16x16x128xf32>
    %18 = vector.extract_strided_slice %12 {offsets = [0, 3, 0], sizes = [16, 16, 128], strides = [1, 1, 1]} : vector<16x20x128xf32> to vector<16x16x128xf32>
    %19 = arith.minimumf %17, %18 : vector<16x16x128xf32>
    %20 = vector.extract_strided_slice %12 {offsets = [0, 4, 0], sizes = [16, 16, 128], strides = [1, 1, 1]} : vector<16x20x128xf32> to vector<16x16x128xf32>
    %21 = arith.minimumf %19, %20 : vector<16x16x128xf32>
    %cst_19 = arith.constant -1.000000e+04 : f32
    %22 = vector.broadcast %cst_19 : f32 to vector<20x20x128xf32>
    %c0_20 = arith.constant 0 : index
    %c0_21 = arith.constant 0 : index
    %c0_22 = arith.constant 0 : index
    %23 = vector.load %arg3[%c0_20, %c0_21, %c0_22] : memref<20x20x128xf32, #tpu.memory_space<vmem>>, vector<20x20x128xf32>
    tpu.vector_store %arg3[%c0_20, %c0_21, %c0_22], %22 {strides = array<i32>} : memref<20x20x128xf32, #tpu.memory_space<vmem>>, vector<20x20x128xf32>,
    %c2_23 = arith.constant 2 : index
    %c2_24 = arith.constant 2 : index
    %c0_25 = arith.constant 0 : index
    %24 = vector.load %arg3[%c2_23, %c2_24, %c0_25] : memref<20x20x128xf32, #tpu.memory_space<vmem>>, vector<16x16x128xf32>
    tpu.vector_store %arg3[%c2_23, %c2_24, %c0_25], %21 {strides = array<i32>} : memref<20x20x128xf32, #tpu.memory_space<vmem>>, vector<16x16x128xf32>,
    %c0_26 = arith.constant 0 : index
    %c0_27 = arith.constant 0 : index
    %c0_28 = arith.constant 0 : index
    %25 = vector.load %arg3[%c0_26, %c0_27, %c0_28] : memref<20x20x128xf32, #tpu.memory_space<vmem>>, vector<16x20x128xf32>
    %c1_29 = arith.constant 1 : index
    %c0_30 = arith.constant 0 : index
    %c0_31 = arith.constant 0 : index
    %26 = vector.load %arg3[%c1_29, %c0_30, %c0_31] : memref<20x20x128xf32, #tpu.memory_space<vmem>>, vector<16x20x128xf32>
    %27 = arith.maximumf %25, %26 : vector<16x20x128xf32>
    %c2_32 = arith.constant 2 : index
    %c0_33 = arith.constant 0 : index
    %c0_34 = arith.constant 0 : index
    %28 = vector.load %arg3[%c2_32, %c0_33, %c0_34] : memref<20x20x128xf32, #tpu.memory_space<vmem>>, vector<16x20x128xf32>
    %29 = arith.maximumf %27, %28 : vector<16x20x128xf32>
    %c3_35 = arith.constant 3 : index
    %c0_36 = arith.constant 0 : index
    %c0_37 = arith.constant 0 : index
    %30 = vector.load %arg3[%c3_35, %c0_36, %c0_37] : memref<20x20x128xf32, #tpu.memory_space<vmem>>, vector<16x20x128xf32>
    %31 = arith.maximumf %29, %30 : vector<16x20x128xf32>
    %c4_38 = arith.constant 4 : index
    %c0_39 = arith.constant 0 : index
    %c0_40 = arith.constant 0 : index
    %32 = vector.load %arg3[%c4_38, %c0_39, %c0_40] : memref<20x20x128xf32, #tpu.memory_space<vmem>>, vector<16x20x128xf32>
    %33 = arith.maximumf %31, %32 : vector<16x20x128xf32>
    %34 = vector.extract_strided_slice %33 {offsets = [0, 0, 0], sizes = [16, 16, 128], strides = [1, 1, 1]} : vector<16x20x128xf32> to vector<16x16x128xf32>
    %35 = vector.extract_strided_slice %33 {offsets = [0, 1, 0], sizes = [16, 16, 128], strides = [1, 1, 1]} : vector<16x20x128xf32> to vector<16x16x128xf32>
    %36 = arith.maximumf %34, %35 : vector<16x16x128xf32>
    %37 = vector.extract_strided_slice %33 {offsets = [0, 2, 0], sizes = [16, 16, 128], strides = [1, 1, 1]} : vector<16x20x128xf32> to vector<16x16x128xf32>
    %38 = arith.maximumf %36, %37 : vector<16x16x128xf32>
    %39 = vector.extract_strided_slice %33 {offsets = [0, 3, 0], sizes = [16, 16, 128], strides = [1, 1, 1]} : vector<16x20x128xf32> to vector<16x16x128xf32>
    %40 = arith.maximumf %38, %39 : vector<16x16x128xf32>
    %41 = vector.extract_strided_slice %33 {offsets = [0, 4, 0], sizes = [16, 16, 128], strides = [1, 1, 1]} : vector<16x20x128xf32> to vector<16x16x128xf32>
    %42 = arith.maximumf %40, %41 : vector<16x16x128xf32>
    %c0_41 = arith.constant 0 : index
    %c0_42 = arith.constant 0 : index
    %c0_43 = arith.constant 0 : index
    %43 = vector.load %arg2[%c0_41, %c0_42, %c0_43] : memref<16x16x128xf32, #tpu.memory_space<vmem>>, vector<16x16x128xf32>
    tpu.vector_store %arg2[%c0_41, %c0_42, %c0_43], %42 {strides = array<i32>} : memref<16x16x128xf32, #tpu.memory_space<vmem>>, vector<16x16x128xf32>,
    return
  }
  func.func @transform_0(%arg0: i32) -> (i32, i32, i32) {
    %c0_i32 = arith.constant 0 : i32
    %c0_i32_0 = arith.constant 0 : i32
    %c0_i32_1 = arith.constant 0 : i32
    return %c0_i32, %c0_i32_0, %arg0 : i32, i32, i32
  }
  func.func @transform_1(%arg0: i32) -> (i32, i32, i32) {
    %c0_i32 = arith.constant 0 : i32
    %c0_i32_0 = arith.constant 0 : i32
    %c0_i32_1 = arith.constant 0 : i32
    return %c0_i32, %c0_i32_0, %arg0 : i32, i32, i32
  }
}

</mosaic_0001>

<bundles_post_ra>
// kernel: tpu_custom_call.1
= control target key start
LH: loop header
LB: loop body
LE: loop exit
PB: predicated region body
PF: predicated region fallthrough
CT: control target
= control target key end

     0   :  { %6 = vsyncpa [#allocation4], 0  ;;  %s3587_s0 = inlined_call_operand.hbm [shape: f32[16,16,128], index: 0, kind: input, shape index: {}]   ;;  %s3588_s1 = inlined_call_operand.hbm [shape: f32[16,16,128], index: 1, kind: output, shape index: {}]  }
   0x1   :  { %7 = vsyncpa [#allocation5], 0  ;;  %s12_s8 = sshll.u32 %s3587_s0, 4  ;;  %s2472_s9 = smov [#allocation3]   ;;  %s13_s8 = int_to_ptr.hbm [resolvable:$true] %s12_s8 }
   0x2   :  { %s14_s10 = sshll.u32 %s2472_s9, 4  ;;  %s2473_s11 = smov 128   ;;  %s15_s10 = int_to_ptr.vmem [resolvable:$true] %s14_s10 }
   0x3   :  { %s2474_s12 = smov 8  }
   0x4   :  { %20 = dma.hbm_to_vmem [thread:$0]  %s13_s8, 4096, %s15_s10, [#allocation4], %s2473_s11, %s2473_s11, %s2474_s12  }
   0x5   :  { %2468 = dma.done.wait [#allocation4], 4096  }
   0x6   :  { %2469 = vsyncadd [#allocation4], 4294963200  ;;  %v2475_v0 = vmov 10000.0   ;;  %v25_v1 = vld [vmem:[#allocation3] sm:$0xff]  ;;  %v26_v2 = vld [vmem:[#allocation3 + $0x8] sm:$0xff]  ;;  %vm633_vm0 = vcmask 1046528  }
   0x7   :  { %59 = vst [vmem:[#allocation2 + $0x10] sm:$0xf] %v2475_v0  ;;  %v27_v3 = vld [vmem:[#allocation3 + $0x10] sm:$0xff]  ;;  %v28_v4 = vld [vmem:[#allocation3 + $0x18] sm:$0xff]  ;;  %v29_v5 = vld [vmem:[#allocation3 + $0x20] sm:$0xff]  ;;  %vm778_vm1 = vcmask 1045504  }
   0x8   :  { %62 = vst [vmem:[#allocation2 + $0x28] sm:$0xf] %v2475_v0  ;;  %v30_v6 = vld [vmem:[#allocation3 + $0x28] sm:$0xff]  ;;  %v31_v9 = vld [vmem:[#allocation3 + $0x30] sm:$0xff]  ;;  %v32_v10 = vld [vmem:[#allocation3 + $0x38] sm:$0xff]  ;;  %vm923_vm2 = vcmask 1044480  }
   0x9   :  { %63 = vst [vmem:[#allocation2 + $0x30] sm:$0xff] %v2475_v0  ;;  %v33_v11 = vld [vmem:[#allocation3 + $0x40] sm:$0xff]  ;;  %v34_v13 = vld [vmem:[#allocation3 + $0x48] sm:$0xff]  ;;  %v35_v14 = vld [vmem:[#allocation3 + $0x50] sm:$0xff]  ;;  %vm1068_vm3 = vcmask 1043456   ;;  %s2477_s0 = smov [#allocation6]  }
   0xa   :  { %64 = vst [vmem:[#allocation2 + $0x38] sm:$0xff] %v2475_v0  ;;  %v36_v16 = vld [vmem:[#allocation3 + $0x58] sm:$0xff]  ;;  %v37_v17 = vld [vmem:[#allocation3 + $0x60] sm:$0xff]  ;;  %v38_v23 = vld [vmem:[#allocation3 + $0x68] sm:$0xff]  ;;  %s2397_s13 = sshll.u32 %s2477_s0, 4  ;;  %s2399_s16 = sshll.u32 %s3588_s1, 4  ;;  %s2398_s13 = int_to_ptr.vmem [resolvable:$true] %s2397_s13  ;;  %s2400_s16 = int_to_ptr.hbm [resolvable:$true] %s2399_s16 }
   0xb   :  { %65 = vst [vmem:[#allocation2 + $0x40] sm:$0xf] %v2475_v0  ;;  %v39_v24 = vld [vmem:[#allocation3 + $0x70] sm:$0xff]  ;;  %v40_v29 = vld [vmem:[#allocation3 + $0x78] sm:$0xff]  ;;  %v41_v35 = vld [vmem:[#allocation3 + $0x80] sm:$0xff] }
   0xc   :  { %66 = vst [vmem:[#allocation2 + $0x48] sm:$0xff] %v2475_v0  ;;  %v42_v48 = vld [vmem:[#allocation3 + $0x88] sm:$0xff]  ;;  %v43_v49 = vld [vmem:[#allocation3 + $0x90] sm:$0xff]  ;;  %v44_v54 = vld [vmem:[#allocation3 + $0x98] sm:$0xff] }
   0xd   :  { %67 = vst [vmem:[#allocation2 + $0x50] sm:$0xff] %v2475_v0 }
   0xe   :  { %68 = vst [vmem:[#allocation2 + $0x58] sm:$0xf] %v2475_v0  ;;  %v152_v7 = vld [vmem:[#allocation2 + $0x10] sm:$0xf] }
   0xf   :  { %69 = vst [vmem:[#allocation2 + $0x60] sm:$0xff] %v2475_v0  ;;  %v201_v8 = vld [vmem:[#allocation2 + $0x28] sm:$0xf] }
  0x10   :  { %70 = vst [vmem:[#allocation2 + $0x68] sm:$0xff] %v2475_v0  ;;  %v249_v12 = vmin.f32 %v152_v7, %v201_v8  ;;  %v155_v15 = vld [vmem:[#allocation2 + $0x28] sm:$0xf] }
  0x11   :  { %71 = vst [vmem:[#allocation2 + $0x70] sm:$0xf] %v2475_v0 }
  0x12   :  { %72 = vst [vmem:[#allocation2 + $0x78] sm:$0xff] %v2475_v0 }
  0x13   :  { %73 = vst [vmem:[#allocation2 + $0x80] sm:$0xff] %v2475_v0 }
  0x14   :  { %74 = vst [vmem:[#allocation2 + $0x88] sm:$0xf] %v2475_v0 }
  0x15   :  { %75 = vst [vmem:[#allocation2 + $0x90] sm:$0xff] %v2475_v0 }
  0x16   :  { %76 = vst [vmem:[#allocation2 + $0x98] sm:$0xff] %v2475_v0 }
  0x17   :  { %77 = vst [vmem:[#allocation2 + $0xa0] sm:$0xf] %v2475_v0 }
  0x18   :  { %78 = vst [vmem:[#allocation2 + $0xa8] sm:$0xff] %v2475_v0 }
  0x19   :  { %79 = vst [vmem:[#allocation2 + $0xb0] sm:$0xff] %v2475_v0 }
  0x1a   :  { %80 = vst [vmem:[#allocation2 + $0xb8] sm:$0xf] %v2475_v0 }
  0x1b   :  { %81 = vst [vmem:[#allocation2 + $0xc0] sm:$0xff] %v2475_v0 }
  0x1c   :  { %82 = vst [vmem:[#allocation2 + $0xc8] sm:$0xff] %v2475_v0 }
  0x1d   :  { %83 = vst [vmem:[#allocation2 + $0xd0] sm:$0xf] %v2475_v0 }
  0x1e   :  { %84 = vst [vmem:[#allocation2 + $0xd8] sm:$0xff] %v2475_v0 }
  0x1f   :  { %85 = vst [vmem:[#allocation2 + $0xe0] sm:$0xff] %v2475_v0 }
  0x20   :  { %86 = vst [vmem:[#allocation2 + $0xe8] sm:$0xf] %v2475_v0 }
  0x21   :  { %87 = vst [vmem:[#allocation2 + $0xf0] sm:$0xff] %v2475_v0 }
  0x22   :  { %88 = vst [vmem:[#allocation2 + $0xf8] sm:$0xff] %v2475_v0 }
  0x23   :  { %89 = vst [vmem:[#allocation2 + $0x100] sm:$0xf] %v2475_v0 }
  0x24   :  { %90 = vst [vmem:[#allocation2 + $0x108] sm:$0xff] %v2475_v0 }
  0x25   :  { %91 = vst [vmem:[#allocation2 + $0x110] sm:$0xff] %v2475_v0 }
  0x26   :  { %92 = vst [vmem:[#allocation2 + $0x118] sm:$0xf] %v2475_v0 }
  0x27   :  { %93 = vst [vmem:[#allocation2 + $0x120] sm:$0xff] %v2475_v0 }
  0x28   :  { %94 = vst [vmem:[#allocation2 + $0x128] sm:$0xff] %v2475_v0 }
  0x29   :  { %95 = vst [vmem:[#allocation2 + $0x130] sm:$0xf] %v2475_v0 }
  0x2a   :  { %96 = vst [vmem:[#allocation2 + $0x138] sm:$0xff] %v2475_v0 }
  0x2b   :  { %97 = vst [vmem:[#allocation2 + $0x140] sm:$0xff] %v2475_v0 }
  0x2c   :  { %98 = vst [vmem:[#allocation2 + $0x148] sm:$0xf] %v2475_v0 }
  0x2d   :  { %99 = vst [vmem:[#allocation2 + $0x150] sm:$0xff] %v2475_v0 }
  0x2e   :  { %100 = vst [vmem:[#allocation2 + $0x158] sm:$0xff] %v2475_v0 }
  0x2f   :  { %101 = vst [vmem:[#allocation2 + $0x160] sm:$0xf] %v2475_v0 }
  0x30   :  { %102 = vst [vmem:[#allocation2 + $0x168] sm:$0xff] %v2475_v0 }
  0x31   :  { %103 = vst [vmem:[#allocation2 + $0x170] sm:$0xff] %v2475_v0 }
  0x32   :  { %104 = vst [vmem:[#allocation2 + $0x178] sm:$0xf] %v2475_v0 }
  0x33   :  { %105 = vst [vmem:[#allocation2 + $0x180] sm:$0xff] %v2475_v0 }
  0x34   :  { %106 = vst [vmem:[#allocation2 + $0x188] sm:$0xff] %v2475_v0 }
  0x35   :  { %107 = vst [vmem:[#allocation2 + $0x190] sm:$0xf] %v2475_v0 }
  0x36   :  { %108 = vst [vmem:[#allocation2 + $0x198] sm:$0xff] %v2475_v0 }
  0x37   :  { %109 = vst [vmem:[#allocation2 + $0x1a0] sm:$0xff] %v2475_v0 }
  0x38   :  { %110 = vst [vmem:[#allocation2 + $0x1a8] sm:$0xf] %v2475_v0 }
  0x39   :  { %113 = vst [vmem:[#allocation2 + $0x1c0] sm:$0xf] %v2475_v0 }
  0x3a   :  { %116 = vst [vmem:[#allocation2 + $0x1d8] sm:$0xf] %v2475_v0 }
  0x3b   :  { %118 = vst [vmem:[#allocation2 + $0x32] sm:$0xff] %v25_v1 }
  0x3c   :  { %119 = vst [vmem:[#allocation2 + $0x3a] sm:$0xff] %v26_v2  ;;  %v45_v2 = vld [vmem:[#allocation3 + $0xa0] sm:$0xff] }
  0x3d   :  { %120 = vst [vmem:[#allocation2 + $0x4a] sm:$0xff] %v27_v3  ;;  %v46_v3 = vld [vmem:[#allocation3 + $0xa8] sm:$0xff] }
  0x3e   :  { %121 = vst [vmem:[#allocation2 + $0x52] sm:$0xff] %v28_v4 }
  0x3f   :  { %122 = vst [vmem:[#allocation2 + $0x62] sm:$0xff] %v29_v5 }
  0x40   :  { %123 = vst [vmem:[#allocation2 + $0x6a] sm:$0xff] %v30_v6 }
  0x41   :  { %124 = vst [vmem:[#allocation2 + $0x7a] sm:$0xff] %v31_v9 }
  0x42   :  { %125 = vst [vmem:[#allocation2 + $0x82] sm:$0xff] %v32_v10  ;;  %v295_v18 = vld [vmem:[#allocation2 + $0x30] sm:$0xff] }
  0x43   :  { %126 = vst [vmem:[#allocation2 + $0x92] sm:$0xff] %v33_v11  ;;  %v343_v19 = vmin.f32 %v295_v18, 10000.0  ;;  %v296_v20 = vld [vmem:[#allocation2 + $0x38] sm:$0xff]  ;;  %v297_v21 = vld [vmem:[#allocation2 + $0x40] sm:$0xf] }
  0x44   :  { %v204_v22 = vld [vmem:[#allocation2 + $0x40] sm:$0xf]  ;;  %127 = vst [vmem:[#allocation2 + $0x9a] sm:$0xff] %v34_v13  ;;  %v2494_v25 = vld [vmem:[#allocation2 + $0x48] sm:$0xff]  ;;  %v344_v26 = vmin.f32 %v296_v20, 10000.0  ;;  %v345_v27 = vmin.f32 %v249_v12, %v297_v21 }
  0x45   :  { %v252_v28 = vmin.f32 %v155_v15, %v204_v22  ;;  %128 = vst [vmem:[#allocation2 + $0xaa] sm:$0xff] %v35_v14  ;;  %v440_v30 = vmin.f32 %v343_v19, %v2494_v25  ;;  %v2497_v31 = vld [vmem:[#allocation2 + $0x50] sm:$0xff]  ;;  %v394_v32 = vld [vmem:[#allocation2 + $0x58] sm:$0xf]  ;;  %v253_v34 = vmin.f32 %v295_v18, %v2494_v25  ;;  %v158_v40 = vld [vmem:[#allocation2 + $0x40] sm:$0xf] }
  0x46   :  { %v300_v33 = vld [vmem:[#allocation2 + $0x58] sm:$0xf]  ;;  %129 = vst [vmem:[#allocation2 + $0xb2] sm:$0xff] %v36_v16  ;;  %v2500_v36 = vld [vmem:[#allocation2 + $0x60] sm:$0xff]  ;;  %v441_v37 = vmin.f32 %v344_v26, %v2497_v31  ;;  %v442_v38 = vmin.f32 %v345_v27, %v394_v32  ;;  %v254_v47 = vmin.f32 %v296_v20, %v2497_v31  ;;  %v47_v18 = vld [vmem:[#allocation3 + $0xb0] sm:$0xff] }
  0x47   :  { %v348_v39 = vmin.f32 %v252_v28, %v300_v33  ;;  %v207_v41 = vld [vmem:[#allocation2 + $0x58] sm:$0xf]  ;;  %130 = vst [vmem:[#allocation2 + $0xc2] sm:$0xff] %v37_v17  ;;  %v2504_v42 = vmin.f32 %v440_v30, %v2500_v36  ;;  %v2506_v43 = vld [vmem:[#allocation2 + $0x68] sm:$0xff]  ;;  %v491_v44 = vld [vmem:[#allocation2 + $0x70] sm:$0xf]  ;;  %v349_v46 = vmin.f32 %v253_v34, %v2500_v36 }
  0x48   :  { %v397_v45 = vld [vmem:[#allocation2 + $0x70] sm:$0xf]  ;;  %131 = vst [vmem:[#allocation2 + $0xca] sm:$0xff] %v38_v23  ;;  %v2511_v50 = vmin.f32 %v441_v37, %v2506_v43  ;;  %v2513_v51 = vmin.f32 %v442_v38, %v491_v44  ;;  %v2515_v52 = vld [vmem:[#allocation2 + $0x78] sm:$0xff]  ;;  %v350_v59 = vmin.f32 %v254_v47, %v2506_v43  ;;  %v255_v60 = vmin.f32 %v158_v40, %v207_v41  ;;  %v50_v30 = vld [vmem:[#allocation3 + $0xc8] sm:$0xff] }
  0x49   :  { %v445_v53 = vmin.f32 %v348_v39, %v397_v45  ;;  %132 = vst [vmem:[#allocation2 + $0xda] sm:$0xff] %v39_v24  ;;  %v2519_v55 = vmin.f32 %v2504_v42, %v2515_v52  ;;  %v2521_v56 = vld [vmem:[#allocation2 + $0x80] sm:$0xff]  ;;  %v494_v57 = vld [vmem:[#allocation2 + $0x88] sm:$0xf]  ;;  %v446_v58 = vmin.f32 %v349_v46, %v2515_v52  ;;  %v303_v8 = vld [vmem:[#allocation2 + $0x70] sm:$0xf]  ;;  %v256_v38 = vmin.f32 %v2494_v25, %v2500_v36 }
  0x4a   :  { %133 = vst [vmem:[#allocation2 + $0xe2] sm:$0xff] %v40_v29  ;;  %v637_v61 = vrot.slane %v2513_v51, 1  ;;  %v782_v62 = vrot.slane %v2513_v51, 2  ;;  %v927_v63 = vrot.slane %v2513_v51, 3  ;;  %v1072_v0 = vrot.slane %v2513_v51, 4  ;;  %v2529_v1 = vld [vmem:[#allocation2 + $0x90] sm:$0xff] }
  0x4b   :  { %134 = vst [vmem:[#allocation2 + $0xf2] sm:$0xff] %v41_v35  ;;  %v2533_v4 = vmin.f32 %v2511_v50, %v2521_v56  ;;  %v2535_v5 = vmin.f32 %v445_v53, %v494_v57  ;;  %v2538_v6 = vmin.f32 %v446_v58, %v2529_v1  ;;  %v447_v7 = vmin.f32 %v350_v59, %v2521_v56  ;;  %v2543_v10 = vld [vmem:[#allocation2 + $0x88] sm:$0xf]  ;;  %v2551_v17 = vld [vmem:[#allocation2 + $0x98] sm:$0xff]  ;;  %v49_v24 = vld [vmem:[#allocation3 + $0xc0] sm:$0xff] }
  0x4c   :  { %135 = vst [vmem:[#allocation2 + $0xfa] sm:$0xff] %v42_v48  ;;  %v2541_v9 = vmin.f32 %v255_v60, %v303_v8  ;;  %v634_v11 = vrot.slane %v2504_v42, 1  ;;  %v635_v12 = vrot.slane %v2511_v50, 1  ;;  %v48_v19 = vld [vmem:[#allocation3 + $0xb8] sm:$0xff]  ;;  %v779_v28 = vrot.slane %v2504_v42, 2  ;;  %v51_v40 = vld [vmem:[#allocation3 + $0xd0] sm:$0xff] }
  0x4d   :  { %136 = vst [vmem:[#allocation2 + $0x10a] sm:$0xff] %v43_v49  ;;  %v2554_v20 = vmin.f32 %v447_v7, %v2551_v17  ;;  %v161_v29 = vld [vmem:[#allocation2 + $0x58] sm:$0xf]  ;;  %v780_v32 = vrot.slane %v2511_v50, 2  ;;  %v924_v33 = vrot.slane %v2504_v42, 3  ;;  %v925_v34 = vrot.slane %v2511_v50, 3 }
  0x4e   :  { %137 = vst [vmem:[#allocation2 + $0x112] sm:$0xff] %v44_v54  ;;  %v448_v21 = vmin.f32 %v2541_v9, %v2543_v10  ;;  %v636_v22 = vsel %vm633_vm0, %v634_v11, %v635_v12  ;;  %v638_v23 = vsel %vm633_vm0, %v635_v12, %v637_v61  ;;  %v1069_v35 = vrot.slane %v2504_v42, 4  ;;  %v210_v39 = vld [vmem:[#allocation2 + $0x70] sm:$0xf]  ;;  %v213_v48 = vld [vmem:[#allocation2 + $0x88] sm:$0xf] }
  0x4f   :  { %138 = vst [vmem:[#allocation2 + $0x122] sm:$0xff] %v45_v2  ;;  %v746_v26 = vmin.f32 %v2504_v42, %v636_v22  ;;  %v747_v27 = vmin.f32 %v2511_v50, %v638_v23  ;;  %v1070_v37 = vrot.slane %v2511_v50, 4  ;;  %v781_v41 = vsel %vm778_vm1, %v779_v28, %v780_v32  ;;  %v164_v47 = vld [vmem:[#allocation2 + $0x70] sm:$0xf]  ;;  %v52_v42 = vld [vmem:[#allocation3 + $0xd8] sm:$0xff]  ;;  %v53_v53 = vld [vmem:[#allocation3 + $0xe0] sm:$0xff] }
  0x50   :  { %139 = vst [vmem:[#allocation2 + $0x12a] sm:$0xff] %v46_v3  ;;  %v783_v44 = vsel %vm778_vm1, %v780_v32, %v782_v62  ;;  %v926_v45 = vsel %vm923_vm2, %v924_v33, %v925_v34  ;;  %v928_v46 = vsel %vm923_vm2, %v925_v34, %v927_v63  ;;  %v54_v54 = vld [vmem:[#allocation3 + $0xe8] sm:$0xff]  ;;  %v352_v57 = vmin.f32 %v256_v38, %v2515_v52  ;;  %v55_v62 = vld [vmem:[#allocation3 + $0xf0] sm:$0xff]  ;;  %v216_v8 = vld [vmem:[#allocation2 + $0xa0] sm:$0xf] }
  0x51   :  { %140 = vst [vmem:[#allocation2 + $0x13a] sm:$0xff] %v47_v18  ;;  %v891_v49 = vmin.f32 %v746_v26, %v781_v41  ;;  %v892_v50 = vmin.f32 %v747_v27, %v783_v44  ;;  %v1071_v51 = vsel %vm1068_vm3, %v1069_v35, %v1070_v37  ;;  %v1073_v25 = vsel %vm1068_vm3, %v1070_v37, %v1072_v0  ;;  %v306_v60 = vld [vmem:[#allocation2 + $0x88] sm:$0xf]  ;;  %v56_v11 = vld [vmem:[#allocation3 + $0xf8] sm:$0xff]  ;;  %v309_v27 = vld [vmem:[#allocation2 + $0xa0] sm:$0xf] }
  0x52   :  { %141 = vst [vmem:[#allocation2 + $0x142] sm:$0xff] %v48_v19  ;;  %v257_v58 = vmin.f32 %v2497_v31, %v2506_v43  ;;  %v258_v59 = vmin.f32 %v161_v29, %v210_v39  ;;  %v259_v61 = vmin.f32 %v2500_v36, %v2515_v52  ;;  %v260_v0 = vmin.f32 %v2506_v43, %v2521_v56  ;;  %v167_v3 = vld [vmem:[#allocation2 + $0x88] sm:$0xf]  ;;  %v170_v19 = vld [vmem:[#allocation2 + $0xa0] sm:$0xf]  ;;  %v2596_v29 = vld [vmem:[#allocation2 + $0xb0] sm:$0xff] }
  0x53   :  { %142 = vst [vmem:[#allocation2 + $0x152] sm:$0xff] %v49_v24  ;;  %v1036_v63 = vmin.f32 %v891_v49, %v926_v45  ;;  %v1037_v2 = vmin.f32 %v892_v50, %v928_v46  ;;  %v261_v7 = vmin.f32 %v164_v47, %v213_v48  ;;  %v262_v18 = vmin.f32 %v2515_v52, %v2529_v1  ;;  %v2587_v22 = vld [vmem:[#allocation2 + $0xa8] sm:$0xff]  ;;  %v403_v28 = vld [vmem:[#allocation2 + $0xa0] sm:$0xf]  ;;  %v219_v35 = vld [vmem:[#allocation2 + $0xb8] sm:$0xf] }
  0x54   :  { %143 = vst [vmem:[#allocation2 + $0x15a] sm:$0xff] %v50_v30  ;;  %v353_v12 = vmin.f32 %v257_v58, %v2521_v56  ;;  %v354_v31 = vmin.f32 %v258_v59, %v306_v60  ;;  %v355_v36 = vmin.f32 %v259_v61, %v2529_v1  ;;  %v449_v24 = vmin.f32 %v352_v57, %v2529_v1  ;;  %v497_v34 = vld [vmem:[#allocation2 + $0xa0] sm:$0xf]  ;;  %v312_v10 = vld [vmem:[#allocation2 + $0xb8] sm:$0xf]  ;;  %v2617_v47 = vld [vmem:[#allocation2 + $0xc8] sm:$0xff] }
  0x55   :  { %144 = vst [vmem:[#allocation2 + $0x16a] sm:$0xff] %v51_v40  ;;  %v2589_v23 = vmin.f32 %v1036_v63, %v1071_v51  ;;  %v2591_v43 = vmin.f32 %v1037_v2, %v1073_v25  ;;  %v263_v26 = vmin.f32 %v2521_v56, %v2551_v17  ;;  %v356_v52 = vmin.f32 %v260_v0, %v2551_v17  ;;  %v173_v40 = vld [vmem:[#allocation2 + $0xb8] sm:$0xf]  ;;  %v2608_v41 = vld [vmem:[#allocation2 + $0xc0] sm:$0xff]  ;;  %v222_v25 = vld [vmem:[#allocation2 + $0xd0] sm:$0xf] }
  0x56   :  { %145 = vst [vmem:[#allocation2 + $0x172] sm:$0xff] %v52_v42  ;;  %v450_v30 = vmin.f32 %v353_v12, %v2551_v17  ;;  %v264_v32 = vmin.f32 %v167_v3, %v216_v8  ;;  %v357_v33 = vmin.f32 %v261_v7, %v309_v27  ;;  %v451_v37 = vmin.f32 %v354_v31, %v403_v28  ;;  %v500_v51 = vld [vmem:[#allocation2 + $0xb8] sm:$0xf]  ;;  %v176_v58 = vld [vmem:[#allocation2 + $0xd0] sm:$0xf]  ;;  %v2631_v60 = vld [vmem:[#allocation2 + $0xe0] sm:$0xff] }
  0x57   :  { %146 = vst [vmem:[#allocation2 + $0x182] sm:$0xff] %v53_v53  ;;  %v2603_v38 = vmin.f32 %v448_v21, %v497_v34  ;;  %v265_v56 = vmin.f32 %v2529_v1, %v2587_v22  ;;  %v358_v39 = vmin.f32 %v262_v18, %v2587_v22  ;;  %v452_v44 = vmin.f32 %v355_v36, %v2587_v22  ;;  %v406_v21 = vld [vmem:[#allocation2 + $0xb8] sm:$0xf]  ;;  %v315_v0 = vld [vmem:[#allocation2 + $0xd0] sm:$0xf] }
  0x58   :  { %147 = vst [vmem:[#allocation2 + $0x18a] sm:$0xff] %v54_v54  ;;  %v2612_v45 = vmin.f32 %v449_v24, %v2587_v22  ;;  %v266_v46 = vmin.f32 %v2551_v17, %v2596_v29  ;;  %v359_v9 = vmin.f32 %v263_v26, %v2596_v29  ;;  %v2476_v1 = vmov -10000.0   ;;  %v2629_v59 = vld [vmem:[#allocation2 + $0xd8] sm:$0xff]  ;;  %v409_v3 = vld [vmem:[#allocation2 + $0xd0] sm:$0xf] }
  0x59   :  { %148 = vst [vmem:[#allocation2 + $0x19a] sm:$0xff] %v55_v62  ;;  %v453_v48 = vmin.f32 %v356_v52, %v2596_v29  ;;  %v2622_v42 = vmin.f32 %v450_v30, %v2596_v29  ;;  %v267_v49 = vmin.f32 %v170_v19, %v219_v35  ;;  %v360_v50 = vmin.f32 %v264_v32, %v312_v10  ;;  %v503_v31 = vld [vmem:[#allocation2 + $0xd0] sm:$0xf]  ;;  %v225_v18 = vld [vmem:[#allocation2 + $0xe8] sm:$0xf]  ;;  %v2652_v28 = vld [vmem:[#allocation2 + $0xf8] sm:$0xff] }
  0x5a   :  { %149 = vst [vmem:[#allocation2 + $0x1a2] sm:$0xff] %v56_v11  ;;  %v454_v53 = vmin.f32 %v357_v33, %v406_v21  ;;  %v2624_v17 = vmin.f32 %v451_v37, %v500_v51  ;;  %v268_v54 = vmin.f32 %v2587_v22, %v2608_v41  ;;  %v361_v57 = vmin.f32 %v265_v56, %v2608_v41  ;;  %v179_v26 = vld [vmem:[#allocation2 + $0xe8] sm:$0xf]  ;;  %v2650_v27 = vld [vmem:[#allocation2 + $0xf0] sm:$0xff]  ;;  %v182_v21 = vld [vmem:[#allocation2 + $0x100] sm:$0xf] }
  0x5b   :  { %1213 = vst [vmem:[#allocation2] sm:$0xff] %v2476_v1  ;;  %v455_v61 = vmin.f32 %v358_v39, %v2608_v41  ;;  %v2636_v62 = vmin.f32 %v452_v44, %v2608_v41  ;;  %v269_v63 = vmin.f32 %v2596_v29, %v2617_v47  ;;  %v362_v2 = vmin.f32 %v266_v46, %v2617_v47  ;;  %v318_v33 = vld [vmem:[#allocation2 + $0xe8] sm:$0xf] }
  0x5c   :  { %1215 = vst [vmem:[#allocation2 + $0x10] sm:$0xf] %v2476_v1  ;;  %v456_v7 = vmin.f32 %v359_v9, %v2617_v47  ;;  %v2643_v8 = vmin.f32 %v453_v48, %v2617_v47  ;;  %v270_v11 = vmin.f32 %v173_v40, %v222_v25  ;;  %v363_v12 = vmin.f32 %v267_v49, %v315_v0  ;;  %v412_v34 = vld [vmem:[#allocation2 + $0xe8] sm:$0xf]  ;;  %v2675_v48 = vld [vmem:[#allocation2 + $0x110] sm:$0xff] }
  0x5d   :  { %v457_v36 = vmin.f32 %v360_v50, %v409_v3  ;;  %v2645_v19 = vmin.f32 %v454_v53, %v503_v31  ;;  %v271_v22 = vmin.f32 %v2608_v41, %v2629_v59  ;;  %v364_v24 = vmin.f32 %v268_v54, %v2629_v59  ;;  %1218 = vst [vmem:[#allocation2 + $0x28] sm:$0xf] %v2476_v1  ;;  %v506_v40 = vld [vmem:[#allocation2 + $0xe8] sm:$0xf]  ;;  %v228_v41 = vld [vmem:[#allocation2 + $0x100] sm:$0xf] }
  0x5e   :  { %v458_v29 = vmin.f32 %v361_v57, %v2629_v59  ;;  %v2657_v52 = vmin.f32 %v455_v61, %v2629_v59  ;;  %v272_v30 = vmin.f32 %v2617_v47, %v2631_v60  ;;  %v365_v32 = vmin.f32 %v269_v63, %v2631_v60  ;;  %1219 = vst [vmem:[#allocation2 + $0x30] sm:$0xff] %v2476_v1  ;;  %v2673_v47 = vld [vmem:[#allocation2 + $0x108] sm:$0xff]  ;;  %v321_v53 = vld [vmem:[#allocation2 + $0x100] sm:$0xf]  ;;  %v197_v16 = vld [vmem:[#allocation2 + $0x178] sm:$0xf] }
  0x5f   :  { %v459_v35 = vmin.f32 %v362_v2, %v2631_v60  ;;  %v2665_v37 = vmin.f32 %v456_v7, %v2631_v60  ;;  %v273_v56 = vmin.f32 %v176_v58, %v225_v18  ;;  %v366_v39 = vmin.f32 %v270_v11, %v318_v33  ;;  %1220 = vst [vmem:[#allocation2 + $0x38] sm:$0xff] %v2476_v1  ;;  %v415_v54 = vld [vmem:[#allocation2 + $0x100] sm:$0xf]  ;;  %v231_v2 = vld [vmem:[#allocation2 + $0x118] sm:$0xf] }
  0x60   :  { %v460_v44 = vmin.f32 %v363_v12, %v412_v34  ;;  %v2668_v46 = vmin.f32 %v457_v36, %v506_v40  ;;  %v274_v9 = vmin.f32 %v2629_v59, %v2650_v27  ;;  %v367_v10 = vmin.f32 %v271_v22, %v2650_v27  ;;  %1221 = vst [vmem:[#allocation2 + $0x40] sm:$0xf] %v2476_v1  ;;  %v509_v63 = vld [vmem:[#allocation2 + $0x100] sm:$0xf]  ;;  %v324_v36 = vld [vmem:[#allocation2 + $0x118] sm:$0xf] }
  0x61   :  { %v461_v49 = vmin.f32 %v364_v24, %v2650_v27  ;;  %v2680_v50 = vmin.f32 %v458_v29, %v2650_v27  ;;  %v275_v51 = vmin.f32 %v2631_v60, %v2652_v28  ;;  %v368_v25 = vmin.f32 %v272_v30, %v2652_v28  ;;  %1273 = vst [vmem:[#allocation2 + $0x32] sm:$0xff] %v2589_v23  ;;  %v185_v23 = vld [vmem:[#allocation2 + $0x118] sm:$0xf]  ;;  %v2696_v11 = vld [vmem:[#allocation2 + $0x120] sm:$0xff]  ;;  %v2706_v24 = vld [vmem:[#allocation2 + $0x128] sm:$0xff] }
  0x62   :  { %v462_v57 = vmin.f32 %v365_v32, %v2652_v28  ;;  %v2688_v58 = vmin.f32 %v459_v35, %v2652_v28  ;;  %v276_v59 = vmin.f32 %v179_v26, %v228_v41  ;;  %v369_v61 = vmin.f32 %v273_v56, %v321_v53  ;;  %1274 = vst [vmem:[#allocation2 + $0x3a] sm:$0xff] %v2591_v43  ;;  %v418_v22 = vld [vmem:[#allocation2 + $0x118] sm:$0xf]  ;;  %v234_v33 = vld [vmem:[#allocation2 + $0x130] sm:$0xf] }
  0x63   :  { %v463_v0 = vmin.f32 %v366_v39, %v415_v54  ;;  %v2691_v3 = vmin.f32 %v460_v44, %v509_v63  ;;  %v277_v60 = vmin.f32 %v2650_v27, %v2673_v47  ;;  %v370_v7 = vmin.f32 %v274_v9, %v2673_v47  ;;  %1222 = vst [vmem:[#allocation2 + $0x48] sm:$0xff] %v2476_v1  ;;  %v512_v32 = vld [vmem:[#allocation2 + $0x118] sm:$0xf]  ;;  %v188_v39 = vld [vmem:[#allocation2 + $0x130] sm:$0xf] }
  0x64   :  { %v464_v12 = vmin.f32 %v367_v10, %v2673_v47  ;;  %v2701_v31 = vmin.f32 %v461_v49, %v2673_v47  ;;  %v278_v43 = vmin.f32 %v2652_v28, %v2675_v48  ;;  %v371_v18 = vmin.f32 %v275_v51, %v2675_v48  ;;  %1223 = vst [vmem:[#allocation2 + $0x50] sm:$0xff] %v2476_v1  ;;  %v2719_v40 = vld [vmem:[#allocation2 + $0x138] sm:$0xff]  ;;  %v421_v49 = vld [vmem:[#allocation2 + $0x130] sm:$0xf] }
  0x65   :  { %v465_v26 = vmin.f32 %v368_v25, %v2675_v48  ;;  %v2711_v27 = vmin.f32 %v462_v57, %v2675_v48  ;;  %v279_v29 = vmin.f32 %v182_v21, %v231_v2  ;;  %v372_v30 = vmin.f32 %v276_v59, %v324_v36  ;;  %1224 = vst [vmem:[#allocation2 + $0x58] sm:$0xf] %v2476_v1  ;;  %v327_v21 = vld [vmem:[#allocation2 + $0x130] sm:$0xf]  ;;  %v237_v59 = vld [vmem:[#allocation2 + $0x148] sm:$0xf] }
  0x66   :  { %v466_v28 = vmin.f32 %v369_v61, %v418_v22  ;;  %v2714_v34 = vmin.f32 %v463_v0, %v512_v32  ;;  %v280_v35 = vmin.f32 %v2673_v47, %v2696_v11  ;;  %v373_v56 = vmin.f32 %v277_v60, %v2696_v11  ;;  %1225 = vst [vmem:[#allocation2 + $0x60] sm:$0xff] %v2476_v1  ;;  %v2729_v47 = vld [vmem:[#allocation2 + $0x140] sm:$0xff]  ;;  %v515_v57 = vld [vmem:[#allocation2 + $0x130] sm:$0xf]  ;;  %v424_v22 = vld [vmem:[#allocation2 + $0x148] sm:$0xf] }
  0x67   :  { %v467_v41 = vmin.f32 %v370_v7, %v2696_v11  ;;  %v2724_v44 = vmin.f32 %v464_v12, %v2696_v11  ;;  %v281_v9 = vmin.f32 %v2675_v48, %v2706_v24  ;;  %v374_v10 = vmin.f32 %v278_v43, %v2706_v24  ;;  %1226 = vst [vmem:[#allocation2 + $0x68] sm:$0xff] %v2476_v1  ;;  %v330_v12 = vld [vmem:[#allocation2 + $0x148] sm:$0xf] }
  0x68   :  { %v468_v51 = vmin.f32 %v371_v18, %v2706_v24  ;;  %v2734_v25 = vmin.f32 %v465_v26, %v2706_v24  ;;  %v282_v53 = vmin.f32 %v185_v23, %v234_v33  ;;  %v375_v54 = vmin.f32 %v279_v29, %v327_v21  ;;  %1227 = vst [vmem:[#allocation2 + $0x70] sm:$0xf] %v2476_v1  ;;  %v518_v26 = vld [vmem:[#allocation2 + $0x148] sm:$0xf]  ;;  %v192_v29 = vld [vmem:[#allocation2 + $0x150] sm:$0xff] }
  0x69   :  { %v469_v48 = vmin.f32 %v372_v30, %v421_v49  ;;  %v2737_v61 = vmin.f32 %v466_v28, %v515_v57  ;;  %v283_v63 = vmin.f32 %v2696_v11, %v2719_v40  ;;  %v376_v2 = vmin.f32 %v280_v35, %v2719_v40  ;;  %1228 = vst [vmem:[#allocation2 + $0x78] sm:$0xff] %v2476_v1  ;;  %v193_v28 = vld [vmem:[#allocation2 + $0x158] sm:$0xff]  ;;  %v427_v35 = vld [vmem:[#allocation2 + $0x160] sm:$0xf]  ;;  %v196_v57 = vld [vmem:[#allocation2 + $0x170] sm:$0xff] }
  0x6a   :  { %v470_v0 = vmin.f32 %v373_v56, %v2719_v40  ;;  %v2745_v60 = vmin.f32 %v467_v41, %v2719_v40  ;;  %v284_v7 = vmin.f32 %v2706_v24, %v2729_v47  ;;  %v377_v23 = vmin.f32 %v281_v9, %v2729_v47  ;;  %1229 = vst [vmem:[#allocation2 + $0x80] sm:$0xff] %v2476_v1  ;;  %v195_v56 = vld [vmem:[#allocation2 + $0x168] sm:$0xff]  ;;  %v521_v21 = vld [vmem:[#allocation2 + $0x160] sm:$0xf] }
  0x6b   :  { %v471_v43 = vmin.f32 %v374_v10, %v2729_v47  ;;  %v2753_v11 = vmin.f32 %v468_v51, %v2729_v47  ;;  %v285_v18 = vmin.f32 %v188_v39, %v237_v59  ;;  %v378_v36 = vmin.f32 %v282_v53, %v330_v12  ;;  %1230 = vst [vmem:[#allocation2 + $0x88] sm:$0xf] %v2476_v1  ;;  %v333_v39 = vld [vmem:[#allocation2 + $0x160] sm:$0xf]  ;;  %v524_v59 = vld [vmem:[#allocation2 + $0x178] sm:$0xf] }
  0x6c   :  { %v472_v30 = vmin.f32 %v375_v54, %v424_v22  ;;  %v2756_v32 = vmin.f32 %v469_v48, %v518_v26  ;;  %v473_v24 = vmin.f32 %v376_v2, %v192_v29  ;;  %v2758_v33 = vmin.f32 %v470_v0, %v192_v29  ;;  %1231 = vst [vmem:[#allocation2 + $0x90] sm:$0xff] %v2476_v1  ;;  %v244_v49 = vld [vmem:[#allocation2 + $0x180] sm:$0xff]  ;;  %v245_v22 = vld [vmem:[#allocation2 + $0x188] sm:$0xff] }
  0x6d   :  { %v474_v41 = vmin.f32 %v377_v23, %v193_v28  ;;  %v2761_v9 = vmin.f32 %v471_v43, %v193_v28  ;;  %v475_v10 = vmin.f32 %v378_v36, %v427_v35  ;;  %v379_v51 = vmin.f32 %v283_v63, %v192_v29  ;;  %1232 = vst [vmem:[#allocation2 + $0x98] sm:$0xff] %v2476_v1  ;;  %v430_v23 = vld [vmem:[#allocation2 + $0x178] sm:$0xf] }
  0x6e   :  { %v2764_v53 = vmin.f32 %v472_v30, %v521_v21  ;;  %v2766_v54 = vmin.f32 %v473_v24, %v195_v56  ;;  %v380_v48 = vmin.f32 %v284_v7, %v193_v28  ;;  %v381_v2 = vmin.f32 %v285_v18, %v333_v39  ;;  %1233 = vst [vmem:[#allocation2 + $0xa0] sm:$0xf] %v2476_v1  ;;  %v340_v36 = vld [vmem:[#allocation2 + $0x198] sm:$0xff]  ;;  %v191_v7 = vld [vmem:[#allocation2 + $0x148] sm:$0xf] }
  0x6f   :  { %v2769_v0 = vmin.f32 %v474_v41, %v196_v57  ;;  %v2771_v12 = vmin.f32 %v475_v10, %v524_v59  ;;  %v476_v43 = vmin.f32 %v379_v51, %v195_v56  ;;  %v286_v63 = vmin.f32 %v2719_v40, %v192_v29  ;;  %1234 = vst [vmem:[#allocation2 + $0xa8] sm:$0xff] %v2476_v1  ;;  %v194_v18 = vld [vmem:[#allocation2 + $0x160] sm:$0xf]  ;;  %v527_v39 = vld [vmem:[#allocation2 + $0x190] sm:$0xf] }
  0x70   :  { %v477_v26 = vmin.f32 %v380_v48, %v196_v57  ;;  %v478_v30 = vmin.f32 %v381_v2, %v430_v23  ;;  %v289_v24 = vmin.f32 %v192_v29, %v195_v56  ;;  %v292_v35 = vmin.f32 %v195_v56, %v244_v49  ;;  %1235 = vst [vmem:[#allocation2 + $0xb0] sm:$0xff] %v2476_v1  ;;  %v240_v40 = vld [vmem:[#allocation2 + $0x160] sm:$0xf] }
  0x71   :  { %v2776_v41 = vmin.f32 %v476_v43, %v244_v49  ;;  %v382_v10 = vmin.f32 %v286_v63, %v195_v56  ;;  %v287_v21 = vmin.f32 %v2729_v47, %v193_v28  ;;  %v290_v51 = vmin.f32 %v193_v28, %v196_v57  ;;  %1236 = vst [vmem:[#allocation2 + $0xb8] sm:$0xf] %v2476_v1  ;;  %v341_v23 = vld [vmem:[#allocation2 + $0x1a0] sm:$0xff]  ;;  %v243_v43 = vld [vmem:[#allocation2 + $0x178] sm:$0xf] }
  0x72   :  { %v2780_v59 = vmin.f32 %v477_v26, %v245_v22  ;;  %v2782_v48 = vmin.f32 %v478_v30, %v527_v39  ;;  %v385_v29 = vmin.f32 %v289_v24, %v244_v49  ;;  %v388_v2 = vmin.f32 %v292_v35, %v340_v36  ;;  %1237 = vst [vmem:[#allocation2 + $0xc0] sm:$0xff] %v2476_v1  ;;  %v246_v47 = vld [vmem:[#allocation2 + $0x190] sm:$0xf]  ;;  %v342_v26 = vld [vmem:[#allocation2 + $0x1a8] sm:$0xf] }
  0x73   :  { %v479_v15 = vmin.f32 %v382_v10, %v244_v49  ;;  %v293_v14 = vmin.f32 %v196_v57, %v245_v22  ;;  %v383_v56 = vmin.f32 %v287_v21, %v196_v57  ;;  %v386_v63 = vmin.f32 %v290_v51, %v245_v22  ;;  %1238 = vst [vmem:[#allocation2 + $0xc8] sm:$0xff] %v2476_v1  ;;  %v339_v24 = vld [vmem:[#allocation2 + $0x190] sm:$0xf]  ;;  %v336_v57 = vld [vmem:[#allocation2 + $0x178] sm:$0xf] }
  0x74   :  { %3592 = vst [vmem:[#allocation9_spill] sm:$0xff] %v2780_v59  ;;  %v482_v30 = vmin.f32 %v385_v29, %v340_v36  ;;  %v485_v39 = vmin.f32 %v388_v2, 10000.0  ;;  %v288_v51 = vmin.f32 %v191_v7, %v240_v40  ;;  %v291_v28 = vmin.f32 %v194_v18, %v243_v43  ;;  %v433_v29 = vld [vmem:[#allocation2 + $0x190] sm:$0xf]  ;;  %v533_v40 = vld [vmem:[#allocation2 + $0x1c0] sm:$0xf] }
  0x75   :  { %3593 = vst [vmem:[#allocation10_spill] sm:$0xff] %v2782_v48  ;;  %v2789_v35 = vmin.f32 %v479_v15, %v340_v36  ;;  %v389_v13 = vmin.f32 %v293_v14, %v341_v23  ;;  %v480_v59 = vmin.f32 %v383_v56, %v245_v22  ;;  %v483_v49 = vmin.f32 %v386_v63, %v341_v23  ;;  %v436_v36 = vld [vmem:[#allocation2 + $0x1a8] sm:$0xf]  ;;  %v439_v63 = vld [vmem:[#allocation2 + $0x1c0] sm:$0xf] }
  0x76   :  { %1239 = vst [vmem:[#allocation2 + $0xd0] sm:$0xf] %v2476_v1  ;;  %v2792_v10 = vmin.f32 %v482_v30, 10000.0  ;;  %v2794_v21 = vmin.f32 %v485_v39, 10000.0  ;;  %v294_v14 = vmin.f32 %v197_v16, %v246_v47  ;;  %v384_v22 = vmin.f32 %v288_v51, %v336_v57  ;;  %v536_v47 = vld [vmem:[#allocation2 + $0x1d8] sm:$0xf] }
  0x77   :  { %1240 = vst [vmem:[#allocation2 + $0xd8] sm:$0xff] %v2476_v1  ;;  %v486_v2 = vmin.f32 %v389_v13, 10000.0  ;;  %v2797_v48 = vmin.f32 %v480_v59, %v341_v23  ;;  %v2799_v15 = vmin.f32 %v483_v49, 10000.0  ;;  %v387_v56 = vmin.f32 %v291_v28, %v339_v24 }
  0x78   :  { %1241 = vst [vmem:[#allocation2 + $0xe0] sm:$0xff] %v2476_v1  ;;  %v639_v30 = vrot.slane %v2519_v55, 1  ;;  %v640_v7 = vrot.slane %v2533_v4, 1  ;;  %v390_v13 = vmin.f32 %v294_v14, %v342_v26  ;;  %v784_v59 = vrot.slane %v2519_v55, 2  ;;  %v530_v26 = vld [vmem:[#allocation2 + $0x1a8] sm:$0xf] }
  0x79   :  { %1242 = vst [vmem:[#allocation2 + $0xe8] sm:$0xf] %v2476_v1  ;;  %v2805_v18 = vmin.f32 %v486_v2, 10000.0  ;;  %v785_v16 = vrot.slane %v2533_v4, 2  ;;  %v481_v23 = vmin.f32 %v384_v22, %v433_v29  ;;  %v484_v43 = vmin.f32 %v387_v56, %v436_v36 }
  0x7a   :  { %1243 = vst [vmem:[#allocation2 + $0xf0] sm:$0xff] %v2476_v1  ;;  %v641_v28 = vsel %vm633_vm0, %v639_v30, %v640_v7  ;;  %v3594_v39 = vrot.slane %v2535_v5, 1  ;;  %v487_v49 = vmin.f32 %v390_v13, %v439_v63  ;;  %v3595_v36 = vrot.slane %v2535_v5, 2 }
  0x7b   :  { %1244 = vst [vmem:[#allocation2 + $0xf8] sm:$0xff] %v2476_v1  ;;  %v748_v57 = vmin.f32 %v2519_v55, %v641_v28  ;;  %v786_v2 = vsel %vm778_vm1, %v784_v59, %v785_v16  ;;  %v2819_v29 = vmin.f32 %v481_v23, %v530_v26  ;;  %v2821_v14 = vmin.f32 %v484_v43, %v533_v40 }
  0x7c   :  { %v643_v24 = vsel %vm633_vm0, %v640_v7, %v3594_v39  ;;  %1245 = vst [vmem:[#allocation2 + $0x100] sm:$0xf] %v2476_v1  ;;  %v788_v22 = vsel %vm778_vm1, %v785_v16, %v3595_v36  ;;  %v929_v56 = vrot.slane %v2519_v55, 3  ;;  %v2828_v63 = vmin.f32 %v487_v49, %v536_v47 }
  0x7d   :  { %v749_v51 = vmin.f32 %v2533_v4, %v643_v24  ;;  %1246 = vst [vmem:[#allocation2 + $0x108] sm:$0xff] %v2476_v1  ;;  %v893_v30 = vmin.f32 %v748_v57, %v786_v2  ;;  %v930_v13 = vrot.slane %v2533_v4, 3  ;;  %v702_v59 = vrot.slane %v2819_v29, 1 }
  0x7e   :  { %1247 = vst [vmem:[#allocation2 + $0x110] sm:$0xff] %v2476_v1  ;;  %v707_v40 = vrot.slane %v2821_v14, 1  ;;  %v847_v23 = vrot.slane %v2819_v29, 2  ;;  %v992_v47 = vrot.slane %v2819_v29, 3  ;;  %v3596_v39 = vrot.slane %v2535_v5, 3 }
  0x7f   :  { %v894_v7 = vmin.f32 %v749_v51, %v788_v22  ;;  %1248 = vst [vmem:[#allocation2 + $0x118] sm:$0xf] %v2476_v1  ;;  %v931_v28 = vsel %vm923_vm2, %v929_v56, %v930_v13  ;;  %v1074_v57 = vrot.slane %v2519_v55, 4  ;;  %v1075_v51 = vrot.slane %v2533_v4, 4 }
  0x80   :  { %1249 = vst [vmem:[#allocation2 + $0x120] sm:$0xff] %v2476_v1  ;;  %v933_v24 = vsel %vm923_vm2, %v930_v13, %v3596_v39  ;;  %v1038_v49 = vmin.f32 %v893_v30, %v931_v28  ;;  %v644_v2 = vrot.slane %v2538_v6, 1  ;;  %v645_v36 = vrot.slane %v2554_v20, 1 }
  0x81   :  { %1250 = vst [vmem:[#allocation2 + $0x128] sm:$0xff] %v2476_v1  ;;  %v1039_v26 = vmin.f32 %v894_v7, %v933_v24  ;;  %v647_v22 = vrot.slane %v2603_v38, 1  ;;  %v789_v56 = vrot.slane %v2538_v6, 2  ;;  %v1076_v13 = vsel %vm1068_vm3, %v1074_v57, %v1075_v51 }
  0x82   :  { %1251 = vst [vmem:[#allocation2 + $0x130] sm:$0xf] %v2476_v1  ;;  %v3597_v30 = vrot.slane %v2535_v5, 4  ;;  %v790_v4 = vrot.slane %v2554_v20, 2  ;;  %v792_v7 = vrot.slane %v2603_v38, 2  ;;  %v2859_v28 = vmin.f32 %v1038_v49, %v1076_v13 }
  0x83   :  { %1252 = vst [vmem:[#allocation2 + $0x138] sm:$0xff] %v2476_v1  ;;  %v646_v24 = vsel %vm633_vm0, %v644_v2, %v645_v36  ;;  %v648_v43 = vsel %vm633_vm0, %v645_v36, %v647_v22  ;;  %v934_v49 = vrot.slane %v2538_v6, 3  ;;  %v937_v2 = vrot.slane %v2603_v38, 3 }
  0x84   :  { %v1078_v55 = vsel %vm1068_vm3, %v1075_v51, %v3597_v30  ;;  %1253 = vst [vmem:[#allocation2 + $0x140] sm:$0xff] %v2476_v1  ;;  %v750_v5 = vmin.f32 %v2538_v6, %v646_v24  ;;  %v751_v57 = vmin.f32 %v2554_v20, %v648_v43  ;;  %v791_v51 = vsel %vm778_vm1, %v789_v56, %v790_v4 }
  0x85   :  { %v2861_v39 = vmin.f32 %v1039_v26, %v1078_v55  ;;  %1254 = vst [vmem:[#allocation2 + $0x148] sm:$0xf] %v2476_v1  ;;  %v793_v30 = vsel %vm778_vm1, %v790_v4, %v792_v7  ;;  %v935_v26 = vrot.slane %v2554_v20, 3  ;;  %v1079_v36 = vrot.slane %v2538_v6, 4 }
  0x86   :  { %1255 = vst [vmem:[#allocation2 + $0x150] sm:$0xff] %v2476_v1  ;;  %v895_v22 = vmin.f32 %v750_v5, %v791_v51  ;;  %v896_v13 = vmin.f32 %v751_v57, %v793_v30  ;;  %v1080_v43 = vrot.slane %v2554_v20, 4  ;;  %v1082_v56 = vrot.slane %v2603_v38, 4 }
  0x87   :  { %1256 = vst [vmem:[#allocation2 + $0x158] sm:$0xff] %v2476_v1  ;;  %v936_v55 = vsel %vm923_vm2, %v934_v49, %v935_v26  ;;  %v938_v4 = vsel %vm923_vm2, %v935_v26, %v937_v2  ;;  %v649_v7 = vrot.slane %v2612_v45, 1  ;;  %v650_v24 = vrot.slane %v2622_v42, 1 }
  0x88   :  { %1257 = vst [vmem:[#allocation2 + $0x160] sm:$0xf] %v2476_v1  ;;  %v1040_v6 = vmin.f32 %v895_v22, %v936_v55  ;;  %v1041_v16 = vmin.f32 %v896_v13, %v938_v4  ;;  %v1081_v5 = vsel %vm1068_vm3, %v1079_v36, %v1080_v43  ;;  %v1083_v20 = vsel %vm1068_vm3, %v1080_v43, %v1082_v56 }
  0x89   :  { %1258 = vst [vmem:[#allocation2 + $0x168] sm:$0xff] %v2476_v1  ;;  %v651_v38 = vsel %vm633_vm0, %v649_v7, %v650_v24  ;;  %v652_v57 = vrot.slane %v2624_v17, 1  ;;  %v794_v51 = vrot.slane %v2612_v45, 2  ;;  %v795_v30 = vrot.slane %v2622_v42, 2 }
  0x8a   :  { %1259 = vst [vmem:[#allocation2 + $0x170] sm:$0xff] %v2476_v1  ;;  %v2892_v49 = vmin.f32 %v1040_v6, %v1081_v5  ;;  %v2894_v26 = vmin.f32 %v1041_v16, %v1083_v20  ;;  %v752_v2 = vmin.f32 %v2612_v45, %v651_v38  ;;  %v797_v36 = vrot.slane %v2624_v17, 2 }
  0x8b   :  { %1260 = vst [vmem:[#allocation2 + $0x178] sm:$0xf] %v2476_v1  ;;  %v653_v22 = vsel %vm633_vm0, %v650_v24, %v652_v57  ;;  %v796_v13 = vsel %vm778_vm1, %v794_v51, %v795_v30  ;;  %v939_v43 = vrot.slane %v2612_v45, 3  ;;  %v940_v56 = vrot.slane %v2622_v42, 3 }
  0x8c   :  { %1261 = vst [vmem:[#allocation2 + $0x180] sm:$0xff] %v2476_v1  ;;  %v753_v55 = vmin.f32 %v2622_v42, %v653_v22  ;;  %v798_v16 = vsel %vm778_vm1, %v795_v30, %v797_v36  ;;  %v897_v4 = vmin.f32 %v752_v2, %v796_v13  ;;  %v942_v7 = vrot.slane %v2624_v17, 3 }
  0x8d   :  { %1262 = vst [vmem:[#allocation2 + $0x188] sm:$0xff] %v2476_v1  ;;  %v941_v6 = vsel %vm923_vm2, %v939_v43, %v940_v56  ;;  %v1084_v24 = vrot.slane %v2612_v45, 4  ;;  %v1085_v5 = vrot.slane %v2622_v42, 4  ;;  %v1087_v20 = vrot.slane %v2624_v17, 4 }
  0x8e   :  { %1263 = vst [vmem:[#allocation2 + $0x190] sm:$0xf] %v2476_v1  ;;  %v898_v38 = vmin.f32 %v753_v55, %v798_v16  ;;  %v943_v57 = vsel %vm923_vm2, %v940_v56, %v942_v7  ;;  %v1042_v51 = vmin.f32 %v897_v4, %v941_v6  ;;  %v654_v30 = vrot.slane %v2636_v62, 1 }
  0x8f   :  { %1264 = vst [vmem:[#allocation2 + $0x198] sm:$0xff] %v2476_v1  ;;  %v1086_v2 = vsel %vm1068_vm3, %v1084_v24, %v1085_v5  ;;  %v1088_v36 = vsel %vm1068_vm3, %v1085_v5, %v1087_v20  ;;  %v655_v22 = vrot.slane %v2643_v8, 1  ;;  %v657_v45 = vrot.slane %v2645_v19, 1 }
  0x90   :  { %v1043_v13 = vmin.f32 %v898_v38, %v943_v57  ;;  %v1187_v42 = vmin.f32 %v1042_v51, %v1086_v2  ;;  %v799_v17 = vrot.slane %v2636_v62, 2  ;;  %v800_v43 = vrot.slane %v2643_v8, 2  ;;  %1265 = vst [vmem:[#allocation2 + $0x1a0] sm:$0xff] %v2476_v1 }
  0x91   :  { %v656_v56 = vsel %vm633_vm0, %v654_v30, %v655_v22  ;;  %v658_v55 = vsel %vm633_vm0, %v655_v22, %v657_v45  ;;  %v802_v16 = vrot.slane %v2645_v19, 2  ;;  %v944_v4 = vrot.slane %v2636_v62, 3  ;;  %1266 = vst [vmem:[#allocation2 + $0x1a8] sm:$0xf] %v2476_v1 }
  0x92   :  { %v1188_v7 = vmin.f32 %v1043_v13, %v1088_v36  ;;  %v754_v6 = vmin.f32 %v2636_v62, %v656_v56  ;;  %v755_v24 = vmin.f32 %v2643_v8, %v658_v55  ;;  %v801_v5 = vsel %vm778_vm1, %v799_v17, %v800_v43  ;;  %1269 = vst [vmem:[#allocation2 + $0x1c0] sm:$0xf] %v2476_v1 }
  0x93   :  { %v803_v20 = vsel %vm778_vm1, %v800_v43, %v802_v16  ;;  %v945_v38 = vrot.slane %v2643_v8, 3  ;;  %v947_v57 = vrot.slane %v2645_v19, 3  ;;  %v1089_v51 = vrot.slane %v2636_v62, 4  ;;  %1272 = vst [vmem:[#allocation2 + $0x1d8] sm:$0xf] %v2476_v1 }
  0x94   :  { %v899_v30 = vmin.f32 %v754_v6, %v801_v5  ;;  %v900_v2 = vmin.f32 %v755_v24, %v803_v20  ;;  %v1090_v36 = vrot.slane %v2643_v8, 4  ;;  %v1092_v22 = vrot.slane %v2645_v19, 4  ;;  %1275 = vst [vmem:[#allocation2 + $0x4a] sm:$0xff] %v2859_v28 }
  0x95   :  { %v946_v45 = vsel %vm923_vm2, %v944_v4, %v945_v38  ;;  %v948_v13 = vsel %vm923_vm2, %v945_v38, %v947_v57  ;;  %v659_v17 = vrot.slane %v2657_v52, 1  ;;  %v660_v43 = vrot.slane %v2665_v37, 1  ;;  %1276 = vst [vmem:[#allocation2 + $0x52] sm:$0xff] %v2861_v39 }
  0x96   :  { %v1044_v62 = vmin.f32 %v899_v30, %v946_v45  ;;  %v1045_v56 = vmin.f32 %v900_v2, %v948_v13  ;;  %v1091_v55 = vsel %vm1068_vm3, %v1089_v51, %v1090_v36  ;;  %v1093_v8 = vsel %vm1068_vm3, %v1090_v36, %v1092_v22  ;;  %1277 = vst [vmem:[#allocation2 + $0x62] sm:$0xff] %v2892_v49 }
  0x97   :  { %v661_v19 = vsel %vm633_vm0, %v659_v17, %v660_v43  ;;  %v662_v16 = vrot.slane %v2668_v46, 1  ;;  %v804_v4 = vrot.slane %v2657_v52, 2  ;;  %v805_v6 = vrot.slane %v2665_v37, 2  ;;  %1278 = vst [vmem:[#allocation2 + $0x6a] sm:$0xff] %v2894_v26 }
  0x98   :  { %v1189_v24 = vmin.f32 %v1044_v62, %v1091_v55  ;;  %v1190_v1 = vmin.f32 %v1045_v56, %v1093_v8  ;;  %v756_v5 = vmin.f32 %v2657_v52, %v661_v19  ;;  %v807_v20 = vrot.slane %v2668_v46, 2  ;;  %1279 = vst [vmem:[#allocation2 + $0x7a] sm:$0xff] %v1187_v42 }
  0x99   :  { %v663_v28 = vsel %vm633_vm0, %v660_v43, %v662_v16  ;;  %v806_v38 = vsel %vm778_vm1, %v804_v4, %v805_v6  ;;  %v949_v57 = vrot.slane %v2657_v52, 3  ;;  %v950_v51 = vrot.slane %v2665_v37, 3  ;;  %1280 = vst [vmem:[#allocation2 + $0x82] sm:$0xff] %v1188_v7 }
  0x9a   :  { %v757_v39 = vmin.f32 %v2665_v37, %v663_v28  ;;  %v808_v30 = vsel %vm778_vm1, %v805_v6, %v807_v20  ;;  %v901_v2 = vmin.f32 %v756_v5, %v806_v38  ;;  %v952_v36 = vrot.slane %v2668_v46, 3  ;;  %1281 = vst [vmem:[#allocation2 + $0x92] sm:$0xff] %v1189_v24 }
  0x9b   :  { %v951_v49 = vsel %vm923_vm2, %v949_v57, %v950_v51  ;;  %v1094_v22 = vrot.slane %v2657_v52, 4  ;;  %v1095_v45 = vrot.slane %v2665_v37, 4  ;;  %v1097_v13 = vrot.slane %v2668_v46, 4  ;;  %1282 = vst [vmem:[#allocation2 + $0x9a] sm:$0xff] %v1190_v1 }
  0x9c   :  { %v902_v17 = vmin.f32 %v757_v39, %v808_v30  ;;  %v953_v26 = vsel %vm923_vm2, %v950_v51, %v952_v36  ;;  %v1046_v43 = vmin.f32 %v901_v2, %v951_v49  ;;  %v664_v62 = vrot.slane %v2680_v50, 1 }
  0x9d   :  { %v1096_v56 = vsel %vm1068_vm3, %v1094_v22, %v1095_v45  ;;  %v1098_v42 = vsel %vm1068_vm3, %v1095_v45, %v1097_v13  ;;  %v665_v55 = vrot.slane %v2688_v58, 1  ;;  %v667_v52 = vrot.slane %v2691_v3, 1 }
  0x9e   :  { %v1047_v37 = vmin.f32 %v902_v17, %v953_v26  ;;  %v1191_v8 = vmin.f32 %v1046_v43, %v1096_v56  ;;  %v809_v46 = vrot.slane %v2680_v50, 2  ;;  %v810_v7 = vrot.slane %v2688_v58, 2 }
  0x9f   :  { %v666_v19 = vsel %vm633_vm0, %v664_v62, %v665_v55  ;;  %v668_v16 = vsel %vm633_vm0, %v665_v55, %v667_v52  ;;  %v812_v4 = vrot.slane %v2691_v3, 2  ;;  %v954_v6 = vrot.slane %v2680_v50, 3 }
  0xa0   :  { %v1192_v24 = vmin.f32 %v1047_v37, %v1098_v42  ;;  %1283 = vst [vmem:[#allocation2 + $0xaa] sm:$0xff] %v1191_v8  ;;  %v758_v5 = vmin.f32 %v2680_v50, %v666_v19  ;;  %v759_v1 = vmin.f32 %v2688_v58, %v668_v16  ;;  %v811_v20 = vsel %vm778_vm1, %v809_v46, %v810_v7 }
  0xa1   :  { %v813_v28 = vsel %vm778_vm1, %v810_v7, %v812_v4  ;;  %v955_v38 = vrot.slane %v2688_v58, 3  ;;  %v957_v57 = vrot.slane %v2691_v3, 3  ;;  %v1099_v51 = vrot.slane %v2680_v50, 4 }
  0xa2   :  { %1284 = vst [vmem:[#allocation2 + $0xb2] sm:$0xff] %v1192_v24  ;;  %v903_v39 = vmin.f32 %v758_v5, %v811_v20  ;;  %v904_v30 = vmin.f32 %v759_v1, %v813_v28  ;;  %v1100_v2 = vrot.slane %v2688_v58, 4  ;;  %v1102_v36 = vrot.slane %v2691_v3, 4 }
  0xa3   :  { %v956_v49 = vsel %vm923_vm2, %v954_v6, %v955_v38  ;;  %v958_v22 = vsel %vm923_vm2, %v955_v38, %v957_v57  ;;  %v669_v45 = vrot.slane %v2701_v31, 1  ;;  %v670_v13 = vrot.slane %v2711_v27, 1 }
  0xa4   :  { %v1048_v17 = vmin.f32 %v903_v39, %v956_v49  ;;  %v1049_v26 = vmin.f32 %v904_v30, %v958_v22  ;;  %v1101_v43 = vsel %vm1068_vm3, %v1099_v51, %v1100_v2  ;;  %v1103_v50 = vsel %vm1068_vm3, %v1100_v2, %v1102_v36 }
  0xa5   :  { %v671_v62 = vsel %vm633_vm0, %v669_v45, %v670_v13  ;;  %v672_v58 = vrot.slane %v2714_v34, 1  ;;  %v814_v3 = vrot.slane %v2701_v31, 2  ;;  %v815_v56 = vrot.slane %v2711_v27, 2 }
  0xa6   :  { %v1193_v42 = vmin.f32 %v1048_v17, %v1101_v43  ;;  %v1194_v55 = vmin.f32 %v1049_v26, %v1103_v50  ;;  %v760_v52 = vmin.f32 %v2701_v31, %v671_v62  ;;  %v817_v37 = vrot.slane %v2714_v34, 2 }
  0xa7   :  { %v673_v8 = vsel %vm633_vm0, %v670_v13, %v672_v58  ;;  %v816_v46 = vsel %vm778_vm1, %v814_v3, %v815_v56  ;;  %v959_v7 = vrot.slane %v2701_v31, 3  ;;  %v960_v19 = vrot.slane %v2711_v27, 3 }
  0xa8   :  { %1285 = vst [vmem:[#allocation2 + $0xc2] sm:$0xff] %v1193_v42  ;;  %v761_v16 = vmin.f32 %v2711_v27, %v673_v8  ;;  %v818_v4 = vsel %vm778_vm1, %v815_v56, %v817_v37  ;;  %v905_v6 = vmin.f32 %v760_v52, %v816_v46  ;;  %v962_v24 = vrot.slane %v2714_v34, 3 }
  0xa9   :  { %1286 = vst [vmem:[#allocation2 + $0xca] sm:$0xff] %v1194_v55  ;;  %v961_v5 = vsel %vm923_vm2, %v959_v7, %v960_v19  ;;  %v1104_v1 = vrot.slane %v2701_v31, 4  ;;  %v1105_v20 = vrot.slane %v2711_v27, 4  ;;  %v1107_v28 = vrot.slane %v2714_v34, 4 }
  0xaa   :  { %v906_v38 = vmin.f32 %v761_v16, %v818_v4  ;;  %v963_v57 = vsel %vm923_vm2, %v960_v19, %v962_v24  ;;  %v1050_v51 = vmin.f32 %v905_v6, %v961_v5  ;;  %v674_v39 = vrot.slane %v2724_v44, 1 }
  0xab   :  { %v1106_v30 = vsel %vm1068_vm3, %v1104_v1, %v1105_v20  ;;  %v1108_v2 = vsel %vm1068_vm3, %v1105_v20, %v1107_v28  ;;  %v675_v36 = vrot.slane %v2734_v25, 1  ;;  %v677_v49 = vrot.slane %v2737_v61, 1 }
  0xac   :  { %v1051_v22 = vmin.f32 %v906_v38, %v963_v57  ;;  %v1195_v31 = vmin.f32 %v1050_v51, %v1106_v30  ;;  %v819_v27 = vrot.slane %v2724_v44, 2  ;;  %v820_v34 = vrot.slane %v2734_v25, 2 }
  0xad   :  { %v676_v45 = vsel %vm633_vm0, %v674_v39, %v675_v36  ;;  %v678_v13 = vsel %vm633_vm0, %v675_v36, %v677_v49  ;;  %v822_v17 = vrot.slane %v2737_v61, 2  ;;  %v964_v26 = vrot.slane %v2724_v44, 3 }
  0xae   :  { %v1196_v43 = vmin.f32 %v1051_v22, %v1108_v2  ;;  %1287 = vst [vmem:[#allocation2 + $0xda] sm:$0xff] %v1195_v31  ;;  %v762_v50 = vmin.f32 %v2724_v44, %v676_v45  ;;  %v763_v62 = vmin.f32 %v2734_v25, %v678_v13  ;;  %v821_v58 = vsel %vm778_vm1, %v819_v27, %v820_v34 }
  0xaf   :  { %v823_v3 = vsel %vm778_vm1, %v820_v34, %v822_v17  ;;  %v965_v56 = vrot.slane %v2734_v25, 3  ;;  %v967_v42 = vrot.slane %v2737_v61, 3  ;;  %v1109_v55 = vrot.slane %v2724_v44, 4 }
  0xb0   :  { %1288 = vst [vmem:[#allocation2 + $0xe2] sm:$0xff] %v1196_v43  ;;  %v907_v52 = vmin.f32 %v762_v50, %v821_v58  ;;  %v908_v37 = vmin.f32 %v763_v62, %v823_v3  ;;  %v1110_v8 = vrot.slane %v2734_v25, 4  ;;  %v1112_v46 = vrot.slane %v2737_v61, 4 }
  0xb1   :  { %v966_v7 = vsel %vm923_vm2, %v964_v26, %v965_v56  ;;  %v968_v19 = vsel %vm923_vm2, %v965_v56, %v967_v42  ;;  %v679_v16 = vrot.slane %v2745_v60, 1  ;;  %v680_v4 = vrot.slane %v2753_v11, 1 }
  0xb2   :  { %v1052_v6 = vmin.f32 %v907_v52, %v966_v7  ;;  %v1053_v24 = vmin.f32 %v908_v37, %v968_v19  ;;  %v1111_v5 = vsel %vm1068_vm3, %v1109_v55, %v1110_v8  ;;  %v1113_v44 = vsel %vm1068_vm3, %v1110_v8, %v1112_v46 }
  0xb3   :  { %v681_v1 = vsel %vm633_vm0, %v679_v16, %v680_v4  ;;  %v682_v25 = vrot.slane %v2756_v32, 1  ;;  %v824_v61 = vrot.slane %v2745_v60, 2  ;;  %v825_v20 = vrot.slane %v2753_v11, 2 }
  0xb4   :  { %v1197_v28 = vmin.f32 %v1052_v6, %v1111_v5  ;;  %v1198_v38 = vmin.f32 %v1053_v24, %v1113_v44  ;;  %v764_v57 = vmin.f32 %v2745_v60, %v681_v1  ;;  %v827_v51 = vrot.slane %v2756_v32, 2 }
  0xb5   :  { %v683_v39 = vsel %vm633_vm0, %v680_v4, %v682_v25  ;;  %v826_v30 = vsel %vm778_vm1, %v824_v61, %v825_v20  ;;  %v969_v2 = vrot.slane %v2745_v60, 3  ;;  %v970_v36 = vrot.slane %v2753_v11, 3 }
  0xb6   :  { %1289 = vst [vmem:[#allocation2 + $0xf2] sm:$0xff] %v1197_v28  ;;  %v765_v49 = vmin.f32 %v2753_v11, %v683_v39  ;;  %v828_v22 = vsel %vm778_vm1, %v825_v20, %v827_v51  ;;  %v909_v31 = vmin.f32 %v764_v57, %v826_v30  ;;  %v972_v27 = vrot.slane %v2756_v32, 3 }
  0xb7   :  { %1290 = vst [vmem:[#allocation2 + $0xfa] sm:$0xff] %v1198_v38  ;;  %v971_v34 = vsel %vm923_vm2, %v969_v2, %v970_v36  ;;  %v1114_v45 = vrot.slane %v2745_v60, 4  ;;  %v1115_v13 = vrot.slane %v2753_v11, 4  ;;  %v1117_v17 = vrot.slane %v2756_v32, 4 }
  0xb8   :  { %v910_v26 = vmin.f32 %v765_v49, %v828_v22  ;;  %v973_v43 = vsel %vm923_vm2, %v970_v36, %v972_v27  ;;  %v1054_v50 = vmin.f32 %v909_v31, %v971_v34  ;;  %v684_v62 = vrot.slane %v2758_v33, 1 }
  0xb9   :  { %v1116_v58 = vsel %vm1068_vm3, %v1114_v45, %v1115_v13  ;;  %v1118_v3 = vsel %vm1068_vm3, %v1115_v13, %v1117_v17  ;;  %v685_v56 = vrot.slane %v2761_v9, 1  ;;  %v687_v42 = vrot.slane %v2764_v53, 1 }
  0xba   :  { %v1055_v55 = vmin.f32 %v910_v26, %v973_v43  ;;  %v1199_v60 = vmin.f32 %v1054_v50, %v1116_v58  ;;  %v829_v11 = vrot.slane %v2758_v33, 2  ;;  %v830_v32 = vrot.slane %v2761_v9, 2 }
  0xbb   :  { %v686_v52 = vsel %vm633_vm0, %v684_v62, %v685_v56  ;;  %v688_v37 = vsel %vm633_vm0, %v685_v56, %v687_v42  ;;  %v832_v8 = vrot.slane %v2764_v53, 2  ;;  %v974_v46 = vrot.slane %v2758_v33, 3 }
  0xbc   :  { %v1200_v7 = vmin.f32 %v1055_v55, %v1118_v3  ;;  %1291 = vst [vmem:[#allocation2 + $0x10a] sm:$0xff] %v1199_v60  ;;  %v766_v19 = vmin.f32 %v2758_v33, %v686_v52  ;;  %v767_v16 = vmin.f32 %v2761_v9, %v688_v37  ;;  %v831_v4 = vsel %vm778_vm1, %v829_v11, %v830_v32 }
  0xbd   :  { %v833_v6 = vsel %vm778_vm1, %v830_v32, %v832_v8  ;;  %v975_v24 = vrot.slane %v2761_v9, 3  ;;  %v977_v5 = vrot.slane %v2764_v53, 3  ;;  %v1119_v44 = vrot.slane %v2758_v33, 4 }
  0xbe   :  { %1292 = vst [vmem:[#allocation2 + $0x112] sm:$0xff] %v1200_v7  ;;  %v911_v1 = vmin.f32 %v766_v19, %v831_v4  ;;  %v912_v25 = vmin.f32 %v767_v16, %v833_v6  ;;  %v1120_v61 = vrot.slane %v2761_v9, 4  ;;  %v1122_v20 = vrot.slane %v2764_v53, 4  ;;  %v3599_v6 = vld [vmem:[#allocation10_spill] sm:$0xff] }
  0xbf   :  { %v976_v28 = vsel %vm923_vm2, %v974_v46, %v975_v24  ;;  %v978_v38 = vsel %vm923_vm2, %v975_v24, %v977_v5  ;;  %v689_v57 = vrot.slane %v2766_v54, 1  ;;  %v690_v51 = vrot.slane %v2769_v0, 1  ;;  %v3598_v46 = vld [vmem:[#allocation9_spill] sm:$0xff] }
  0xc0   :  { %v1056_v39 = vmin.f32 %v911_v1, %v976_v28  ;;  %v1057_v30 = vmin.f32 %v912_v25, %v978_v38  ;;  %v1121_v2 = vsel %vm1068_vm3, %v1119_v44, %v1120_v61  ;;  %v1123_v33 = vsel %vm1068_vm3, %v1120_v61, %v1122_v20 }
  0xc1   :  { %v691_v36 = vsel %vm633_vm0, %v689_v57, %v690_v51  ;;  %v692_v9 = vrot.slane %v2771_v12, 1  ;;  %v834_v53 = vrot.slane %v2766_v54, 2  ;;  %v835_v49 = vrot.slane %v2769_v0, 2 }
  0xc2   :  { %v1201_v22 = vmin.f32 %v1056_v39, %v1121_v2  ;;  %v1202_v31 = vmin.f32 %v1057_v30, %v1123_v33  ;;  %v768_v27 = vmin.f32 %v2766_v54, %v691_v36  ;;  %v837_v34 = vrot.slane %v2771_v12, 2 }
  0xc3   :  { %v693_v45 = vsel %vm633_vm0, %v690_v51, %v692_v9  ;;  %v836_v13 = vsel %vm778_vm1, %v834_v53, %v835_v49  ;;  %v979_v17 = vrot.slane %v2766_v54, 3  ;;  %v980_v26 = vrot.slane %v2769_v0, 3 }
  0xc4   :  { %1293 = vst [vmem:[#allocation2 + $0x122] sm:$0xff] %v1201_v22  ;;  %v769_v43 = vmin.f32 %v2769_v0, %v693_v45  ;;  %v838_v50 = vsel %vm778_vm1, %v835_v49, %v837_v34  ;;  %v913_v62 = vmin.f32 %v768_v27, %v836_v13  ;;  %v982_v58 = vrot.slane %v2771_v12, 3 }
  0xc5   :  { %1294 = vst [vmem:[#allocation2 + $0x12a] sm:$0xff] %v1202_v31  ;;  %v981_v3 = vsel %vm923_vm2, %v979_v17, %v980_v26  ;;  %v1124_v56 = vrot.slane %v2766_v54, 4  ;;  %v1125_v42 = vrot.slane %v2769_v0, 4  ;;  %v1127_v55 = vrot.slane %v2771_v12, 4 }
  0xc6   :  { %v914_v60 = vmin.f32 %v769_v43, %v838_v50  ;;  %v983_v11 = vsel %vm923_vm2, %v980_v26, %v982_v58  ;;  %v1058_v32 = vmin.f32 %v913_v62, %v981_v3  ;;  %v694_v52 = vrot.slane %v2776_v41, 1 }
  0xc7   :  { %v1126_v37 = vsel %vm1068_vm3, %v1124_v56, %v1125_v42  ;;  %v1128_v8 = vsel %vm1068_vm3, %v1125_v42, %v1127_v55  ;;  %v695_v7 = vrot.slane %v3598_v46, 1  ;;  %v839_v19 = vrot.slane %v2776_v41, 2 }
  0xc8   :  { %v1059_v16 = vmin.f32 %v914_v60, %v983_v11  ;;  %v1203_v54 = vmin.f32 %v1058_v32, %v1126_v37  ;;  %v840_v0 = vrot.slane %v3598_v46, 2  ;;  %v984_v12 = vrot.slane %v2776_v41, 3 }
  0xc9   :  { %v696_v4 = vsel %vm633_vm0, %v694_v52, %v695_v7  ;;  %v3600_v24 = vrot.slane %v3599_v6, 1  ;;  %v985_v44 = vrot.slane %v3598_v46, 3  ;;  %v987_v1 = vrot.slane %v3599_v6, 3 }
  0xca   :  { %v1204_v25 = vmin.f32 %v1059_v16, %v1128_v8  ;;  %1295 = vst [vmem:[#allocation2 + $0x13a] sm:$0xff] %v1203_v54  ;;  %v770_v61 = vmin.f32 %v2776_v41, %v696_v4  ;;  %v841_v28 = vsel %vm778_vm1, %v839_v19, %v840_v0  ;;  %v3601_v38 = vrot.slane %v3599_v6, 2 }
  0xcb   :  { %v698_v5 = vsel %vm633_vm0, %v695_v7, %v3600_v24  ;;  %v986_v51 = vsel %vm923_vm2, %v984_v12, %v985_v44  ;;  %v988_v39 = vsel %vm923_vm2, %v985_v44, %v987_v1  ;;  %v1129_v30 = vrot.slane %v2776_v41, 4 }
  0xcc   :  { %v771_v20 = vmin.f32 %v3598_v46, %v698_v5  ;;  %v843_v57 = vsel %vm778_vm1, %v840_v0, %v3601_v38  ;;  %1296 = vst [vmem:[#allocation2 + $0x142] sm:$0xff] %v1204_v25  ;;  %v915_v2 = vmin.f32 %v770_v61, %v841_v28  ;;  %v1130_v36 = vrot.slane %v3598_v46, 4 }
  0xcd   :  { %v1132_v9 = vrot.slane %v3599_v6, 4  ;;  %v699_v53 = vrot.slane %v2789_v35, 1  ;;  %v700_v49 = vrot.slane %v2797_v48, 1  ;;  %v844_v22 = vrot.slane %v2789_v35, 2 }
  0xce   :  { %v916_v33 = vmin.f32 %v771_v20, %v843_v57  ;;  %v845_v31 = vrot.slane %v2797_v48, 2  ;;  %v1060_v27 = vmin.f32 %v915_v2, %v986_v51  ;;  %v1131_v45 = vsel %vm1068_vm3, %v1129_v30, %v1130_v36 }
  0xcf   :  { %v1133_v41 = vsel %vm1068_vm3, %v1130_v36, %v1132_v9  ;;  %v701_v13 = vsel %vm633_vm0, %v699_v53, %v700_v49  ;;  %v703_v17 = vsel %vm633_vm0, %v700_v49, %v702_v59  ;;  %v989_v56 = vrot.slane %v2789_v35, 3 }
  0xd0   :  { %v1061_v34 = vmin.f32 %v916_v33, %v988_v39  ;;  %v846_v26 = vsel %vm778_vm1, %v844_v22, %v845_v31  ;;  %v848_v43 = vsel %vm778_vm1, %v845_v31, %v847_v23  ;;  %v1205_v50 = vmin.f32 %v1060_v27, %v1131_v45 }
  0xd1   :  { %v772_v58 = vmin.f32 %v2789_v35, %v701_v13  ;;  %v773_v3 = vmin.f32 %v2797_v48, %v703_v17  ;;  %v990_v42 = vrot.slane %v2797_v48, 3  ;;  %v1134_v55 = vrot.slane %v2789_v35, 4  ;;  %v1307_v17 = vld [vmem:[#allocation2 + $0x10] sm:$0xf] }
  0xd2   :  { %v1206_v62 = vmin.f32 %v1061_v34, %v1133_v41  ;;  %v1135_v59 = vrot.slane %v2797_v48, 4  ;;  %1297 = vst [vmem:[#allocation2 + $0x152] sm:$0xff] %v1205_v50  ;;  %v1137_v32 = vrot.slane %v2819_v29, 4  ;;  %v704_v23 = vrot.slane %v2792_v10, 1 }
  0xd3   :  { %v917_v60 = vmin.f32 %v772_v58, %v846_v26  ;;  %v918_v11 = vmin.f32 %v773_v3, %v848_v43  ;;  %v991_v52 = vsel %vm923_vm2, %v989_v56, %v990_v42  ;;  %v993_v37 = vsel %vm923_vm2, %v990_v42, %v992_v47  ;;  %v1355_v26 = vld [vmem:[#allocation2 + $0x28] sm:$0xf]  ;;  %v1449_v3 = vld [vmem:[#allocation2 + $0x30] sm:$0xff] }
  0xd4   :  { %1298 = vst [vmem:[#allocation2 + $0x15a] sm:$0xff] %v1206_v62  ;;  %v1136_v8 = vsel %vm1068_vm3, %v1134_v55, %v1135_v59  ;;  %v705_v35 = vrot.slane %v2799_v15, 1  ;;  %v1138_v7 = vsel %vm1068_vm3, %v1135_v59, %v1137_v32  ;;  %v849_v19 = vrot.slane %v2792_v10, 2 }
  0xd5   :  { %v1062_v46 = vmin.f32 %v917_v60, %v991_v52  ;;  %v1063_v48 = vmin.f32 %v918_v11, %v993_v37  ;;  %v850_v29 = vrot.slane %v2799_v15, 2  ;;  %v994_v47 = vrot.slane %v2792_v10, 3  ;;  %v1450_v60 = vld [vmem:[#allocation2 + $0x38] sm:$0xff]  ;;  %v1451_v11 = vld [vmem:[#allocation2 + $0x40] sm:$0xf] }
  0xd6   :  { %v706_v16 = vsel %vm633_vm0, %v704_v23, %v705_v35  ;;  %v708_v54 = vsel %vm633_vm0, %v705_v35, %v707_v40  ;;  %v3602_v5 = vrot.slane %v2821_v14, 2  ;;  %v995_v1 = vrot.slane %v2799_v15, 3  ;;  %v2418_v52 = vld [vmem:[#allocation2] sm:$0xff] }
  0xd7   :  { %v1207_v0 = vmin.f32 %v1062_v46, %v1136_v8  ;;  %v1208_v12 = vmin.f32 %v1063_v48, %v1138_v7  ;;  %v774_v4 = vmin.f32 %v2792_v10, %v706_v16  ;;  %v775_v6 = vmin.f32 %v2799_v15, %v708_v54  ;;  %v1310_v8 = vld [vmem:[#allocation2 + $0x28] sm:$0xf]  ;;  %v1358_v35 = vld [vmem:[#allocation2 + $0x40] sm:$0xf] }
  0xd8   :  { %v851_v24 = vsel %vm778_vm1, %v849_v19, %v850_v29  ;;  %v853_v44 = vsel %vm778_vm1, %v850_v29, %v3602_v5  ;;  %v997_v40 = vrot.slane %v2821_v14, 3  ;;  %v1139_v20 = vrot.slane %v2792_v10, 4  ;;  %v3196_v19 = vld [vmem:[#allocation2 + $0x48] sm:$0xff] }
  0xd9   :  { %1299 = vst [vmem:[#allocation2 + $0x16a] sm:$0xff] %v1207_v0  ;;  %v919_v25 = vmin.f32 %v774_v4, %v851_v24  ;;  %v920_v61 = vmin.f32 %v775_v6, %v853_v44  ;;  %v1140_v28 = vrot.slane %v2799_v15, 4  ;;  %v996_v38 = vsel %vm923_vm2, %v994_v47, %v995_v1  ;;  %v1454_v47 = vld [vmem:[#allocation2 + $0x58] sm:$0xf]  ;;  %v3202_v44 = vld [vmem:[#allocation2 + $0x60] sm:$0xff] }
  0xda   :  { %1300 = vst [vmem:[#allocation2 + $0x172] sm:$0xff] %v1208_v12  ;;  %v998_v57 = vsel %vm923_vm2, %v995_v1, %v997_v40  ;;  %v1142_v51 = vrot.slane %v2821_v14, 4  ;;  %v709_v39 = vrot.slane %v2794_v21, 1  ;;  %v710_v36 = vrot.slane %v2805_v18, 1  ;;  %v3204_v1 = vld [vmem:[#allocation2 + $0x68] sm:$0xff] }
  0xdb   :  { %v1064_v30 = vmin.f32 %v919_v25, %v996_v38  ;;  %v1065_v2 = vmin.f32 %v920_v61, %v998_v57  ;;  %v1141_v33 = vsel %vm1068_vm3, %v1139_v20, %v1140_v28  ;;  %v854_v10 = vrot.slane %v2794_v21, 2  ;;  %v1643_v40 = vld [vmem:[#allocation2 + $0x70] sm:$0xf] }
  0xdc   :  { %v1143_v9 = vsel %vm1068_vm3, %v1140_v28, %v1142_v51  ;;  %v855_v15 = vrot.slane %v2805_v18, 2  ;;  %v857_v53 = vrot.slane %v2828_v63, 2  ;;  %v711_v14 = vsel %vm633_vm0, %v709_v39, %v710_v36  ;;  %v1550_v51 = vld [vmem:[#allocation2 + $0x70] sm:$0xf] }
  0xdd   :  { %v1209_v49 = vmin.f32 %v1064_v30, %v1141_v33  ;;  %v1210_v22 = vmin.f32 %v1065_v2, %v1143_v9  ;;  %v3603_v31 = vrot.slane %v2828_v63, 1  ;;  %v776_v34 = vmin.f32 %v2794_v21, %v711_v14 }
  0xde   :  { %v856_v41 = vsel %vm778_vm1, %v854_v10, %v855_v15  ;;  %v858_v13 = vsel %vm778_vm1, %v855_v15, %v857_v53  ;;  %v999_v43 = vrot.slane %v2794_v21, 3  ;;  %v1000_v50 = vrot.slane %v2805_v18, 3 }
  0xdf   :  { %v713_v27 = vsel %vm633_vm0, %v710_v36, %v3603_v31  ;;  %1301 = vst [vmem:[#allocation2 + $0x182] sm:$0xff] %v1209_v49  ;;  %v1002_v62 = vrot.slane %v2828_v63, 3  ;;  %v1144_v58 = vrot.slane %v2794_v21, 4  ;;  %v921_v56 = vmin.f32 %v776_v34, %v856_v41 }
  0xe0   :  { %v777_v45 = vmin.f32 %v2805_v18, %v713_v27  ;;  %1302 = vst [vmem:[#allocation2 + $0x18a] sm:$0xff] %v1210_v22  ;;  %v1145_v55 = vrot.slane %v2805_v18, 4  ;;  %v1147_v59 = vrot.slane %v2828_v63, 4  ;;  %v1001_v32 = vsel %vm923_vm2, %v999_v43, %v1000_v50  ;;  %v3198_v18 = vld [vmem:[#allocation2 + $0x50] sm:$0xff]  ;;  %v1547_v63 = vld [vmem:[#allocation2 + $0x58] sm:$0xf] }
  0xe1   :  { %v1003_v23 = vsel %vm923_vm2, %v1000_v50, %v1002_v62  ;;  %v1403_v37 = vmax.f32 %v1307_v17, %v1355_v26  ;;  %v1066_v46 = vmin.f32 %v921_v56, %v1001_v32  ;;  %v1497_v16 = vmax.f32 %v2418_v52, %v1449_v3  ;;  %v3220_v26 = vld [vmem:[#allocation2 + $0x78] sm:$0xff] }
  0xe2   :  { %v922_v42 = vmin.f32 %v777_v45, %v858_v13  ;;  %v1146_v48 = vsel %vm1068_vm3, %v1144_v58, %v1145_v55  ;;  %v1148_v7 = vsel %vm1068_vm3, %v1145_v55, %v1147_v59  ;;  %v1498_v54 = vmax.f32 %v2418_v52, %v1450_v60  ;;  %v3224_v58 = vld [vmem:[#allocation2 + $0x80] sm:$0xff] }
  0xe3   :  { %v1499_v29 = vmax.f32 %v1403_v37, %v1451_v11  ;;  %v1211_v0 = vmin.f32 %v1066_v46, %v1146_v48  ;;  %v1406_v4 = vmax.f32 %v1310_v8, %v1358_v35  ;;  %v1593_v6 = vmax.f32 %v1497_v16, %v3196_v19  ;;  %v1646_v46 = vld [vmem:[#allocation2 + $0x88] sm:$0xf] }
  0xe4   :  { %v1067_v21 = vmin.f32 %v922_v42, %v1003_v23  ;;  %v1594_v24 = vmax.f32 %v1498_v54, %v3198_v18  ;;  %v1407_v61 = vmax.f32 %v1449_v3, %v3196_v19  ;;  %v1408_v20 = vmax.f32 %v1450_v60, %v3198_v18 }
  0xe5   :  { %v1595_v5 = vmax.f32 %v1499_v29, %v1547_v63  ;;  %1303 = vst [vmem:[#allocation2 + $0x19a] sm:$0xff] %v1211_v0  ;;  %v1502_v25 = vmax.f32 %v1406_v4, %v1454_v47  ;;  %v1689_v28 = vmax.f32 %v1593_v6, %v3202_v44 }
  0xe6   :  { %v1212_v12 = vmin.f32 %v1067_v21, %v1148_v7  ;;  %v1690_v38 = vmax.f32 %v1594_v24, %v3204_v1  ;;  %v3211_v30 = vmax.f32 %v1407_v61, %v3202_v44  ;;  %v3214_v2 = vmax.f32 %v1408_v20, %v3204_v1  ;;  %v1361_v61 = vld [vmem:[#allocation2 + $0x58] sm:$0xf] }
  0xe7   :  { %v1691_v57 = vmax.f32 %v1595_v5, %v1643_v40  ;;  %v1598_v39 = vmax.f32 %v1502_v25, %v1550_v51  ;;  %v1785_v33 = vrot.slane %v1689_v28, 1  ;;  %v1929_v9 = vrot.slane %v1689_v28, 2  ;;  %v1316_v51 = vld [vmem:[#allocation2 + $0x58] sm:$0xf] }
  0xe8   :  { %1304 = vst [vmem:[#allocation2 + $0x1a2] sm:$0xff] %v1212_v12  ;;  %v1786_v36 = vrot.slane %v1690_v38, 1  ;;  %v1930_v10 = vrot.slane %v1690_v38, 2  ;;  %v2073_v15 = vrot.slane %v1689_v28, 3  ;;  %v2074_v53 = vrot.slane %v1690_v38, 3 }
  0xe9   :  { %v2217_v49 = vrot.slane %v1689_v28, 4  ;;  %v2218_v22 = vrot.slane %v1690_v38, 4  ;;  %v1788_v27 = vrot.slane %v1691_v57, 1  ;;  %v1932_v34 = vrot.slane %v1691_v57, 2 }
  0xea   :  { %v1787_v14 = vsel %vm633_vm0, %v1785_v33, %v1786_v36  ;;  %v1931_v31 = vsel %vm778_vm1, %v1929_v9, %v1930_v10  ;;  %v2075_v41 = vsel %vm923_vm2, %v2073_v15, %v2074_v53  ;;  %v2076_v17 = vrot.slane %v1691_v57, 3  ;;  %v3242_v15 = vld [vmem:[#allocation2 + $0x90] sm:$0xff] }
  0xeb   :  { %v1897_v45 = vmax.f32 %v1689_v28, %v1787_v14  ;;  %v2219_v13 = vsel %vm1068_vm3, %v2217_v49, %v2218_v22  ;;  %v1789_v43 = vsel %vm633_vm0, %v1786_v36, %v1788_v27  ;;  %v1933_v50 = vsel %vm778_vm1, %v1930_v10, %v1932_v34  ;;  %v1313_v49 = vld [vmem:[#allocation2 + $0x40] sm:$0xf] }
  0xec   :  { %v2220_v62 = vrot.slane %v1691_v57, 4  ;;  %v1692_v3 = vmax.f32 %v1689_v28, %v3220_v26  ;;  %v1898_v42 = vmax.f32 %v1690_v38, %v1789_v43  ;;  %v2077_v55 = vsel %vm923_vm2, %v2074_v53, %v2076_v17  ;;  %v3244_v53 = vld [vmem:[#allocation2 + $0x98] sm:$0xff] }
  0xed   :  { %v2041_v56 = vmax.f32 %v1897_v45, %v1931_v31  ;;  %v1693_v59 = vmax.f32 %v1690_v38, %v3224_v58  ;;  %v1694_v63 = vmax.f32 %v1598_v39, %v1646_v46  ;;  %v1599_v38 = vmax.f32 %v3211_v30, %v3220_v26  ;;  %v1364_v39 = vld [vmem:[#allocation2 + $0x70] sm:$0xf] }
  0xee   :  { %v2221_v60 = vsel %vm1068_vm3, %v2218_v22, %v2220_v62  ;;  %v1790_v11 = vrot.slane %v1692_v3, 1  ;;  %v1934_v32 = vrot.slane %v1692_v3, 2  ;;  %v2078_v23 = vrot.slane %v1692_v3, 3 }
  0xef   :  { %v2185_v52 = vmax.f32 %v2041_v56, %v2075_v41  ;;  %v2042_v37 = vmax.f32 %v1898_v42, %v1933_v50  ;;  %v1791_v8 = vrot.slane %v1693_v59, 1  ;;  %v1935_v35 = vrot.slane %v1693_v59, 2  ;;  %v1457_v42 = vld [vmem:[#allocation2 + $0x70] sm:$0xf] }
  0xf0   :  { %v2079_v21 = vrot.slane %v1693_v59, 3  ;;  %v2222_v48 = vrot.slane %v1692_v3, 4  ;;  %v2223_v7 = vrot.slane %v1693_v59, 4  ;;  %v1793_v6 = vrot.slane %v1694_v63, 1 }
  0xf1   :  { %v2329_v16 = vmax.f32 %v2185_v52, %v2219_v13  ;;  %v2186_v54 = vmax.f32 %v2042_v37, %v2077_v55  ;;  %v1792_v29 = vsel %vm633_vm0, %v1790_v11, %v1791_v8  ;;  %v1936_v47 = vsel %vm778_vm1, %v1934_v32, %v1935_v35  ;;  %v1553_v52 = vld [vmem:[#allocation2 + $0x88] sm:$0xf]  ;;  %v3261_v37 = vld [vmem:[#allocation2 + $0x70] sm:$0xf] }
  0xf2   :  { %v1899_v0 = vmax.f32 %v1692_v3, %v1792_v29  ;;  %v2080_v12 = vsel %vm923_vm2, %v2078_v23, %v2079_v21  ;;  %v2224_v4 = vsel %vm1068_vm3, %v2222_v48, %v2223_v7  ;;  %v1937_v5 = vrot.slane %v1694_v63, 2 }
  0xf3   :  { %2361 = vst [vmem:[#allocation6] sm:$0xff] %v2329_v16  ;;  %v2330_v24 = vmax.f32 %v2186_v54, %v2221_v60  ;;  %v2081_v40 = vrot.slane %v1694_v63, 3  ;;  %v2225_v25 = vrot.slane %v1694_v63, 4  ;;  %v1794_v28 = vsel %vm633_vm0, %v1791_v8, %v1793_v6  ;;  %v3263_v8 = vld [vmem:[#allocation2 + $0x88] sm:$0xf] }
  0xf4   :  { %v2043_v20 = vmax.f32 %v1899_v0, %v1936_v47  ;;  %v1600_v57 = vmax.f32 %v3214_v2, %v3224_v58  ;;  %v1900_v33 = vmax.f32 %v1693_v59, %v1794_v28  ;;  %v1938_v36 = vsel %vm778_vm1, %v1935_v35, %v1937_v5  ;;  %v1649_v16 = vld [vmem:[#allocation2 + $0xa0] sm:$0xf] }
  0xf5   :  { %2362 = vst [vmem:[#allocation6 + $0x8] sm:$0xff] %v2330_v24  ;;  %v2082_v9 = vsel %vm923_vm2, %v2079_v21, %v2081_v40  ;;  %v2226_v10 = vsel %vm1068_vm3, %v2223_v7, %v2225_v25  ;;  %v1695_v30 = vmax.f32 %v1599_v38, %v3242_v15  ;;  %v1409_v14 = vmax.f32 %v1313_v49, %v1361_v61  ;;  %v1460_v7 = vld [vmem:[#allocation2 + $0x88] sm:$0xf]  ;;  %v1556_v6 = vld [vmem:[#allocation2 + $0xa0] sm:$0xf]  ;;  %v3278_v25 = vld [vmem:[#allocation2 + $0xb0] sm:$0xff] }
  0xf6   :  { %v2187_v22 = vmax.f32 %v2043_v20, %v2080_v12  ;;  %v3248_v2 = vmax.f32 %v1600_v57, %v3244_v53  ;;  %v2044_v31 = vmax.f32 %v1900_v33, %v1938_v36  ;;  %v1410_v27 = vmax.f32 %v3196_v19, %v3202_v44  ;;  %v3276_v40 = vld [vmem:[#allocation2 + $0xa8] sm:$0xff] }
  0xf7   :  { %v1411_v34 = vmax.f32 %v3198_v18, %v3204_v1  ;;  %v1412_v45 = vmax.f32 %v1316_v51, %v1364_v39  ;;  %v1795_v13 = vrot.slane %v1695_v30, 1  ;;  %v1939_v43 = vrot.slane %v1695_v30, 2  ;;  %v1652_v51 = vld [vmem:[#allocation2 + $0xb8] sm:$0xf] }
  0xf8   :  { %v2331_v41 = vmax.f32 %v2187_v22, %v2224_v4  ;;  %v1796_v17 = vrot.slane %v3248_v2, 1  ;;  %v2188_v50 = vmax.f32 %v2044_v31, %v2082_v9  ;;  %v1940_v62 = vrot.slane %v3248_v2, 2 }
  0xf9   :  { %v2083_v3 = vrot.slane %v1695_v30, 3  ;;  %v2084_v56 = vrot.slane %v3248_v2, 3  ;;  %v2227_v19 = vrot.slane %v1695_v30, 4  ;;  %v2228_v59 = vrot.slane %v3248_v2, 4 }
  0xfa   :  { %2363 = vst [vmem:[#allocation6 + $0x10] sm:$0xff] %v2331_v41  ;;  %v1797_v55 = vsel %vm633_vm0, %v1795_v13, %v1796_v17  ;;  %v1505_v18 = vmax.f32 %v1409_v14, %v1457_v42  ;;  %v2332_v60 = vmax.f32 %v2188_v50, %v2226_v10  ;;  %v1941_v32 = vsel %vm778_vm1, %v1939_v43, %v1940_v62 }
  0xfb   :  { %v1901_v11 = vmax.f32 %v1695_v30, %v1797_v55  ;;  %v2085_v23 = vsel %vm923_vm2, %v2083_v3, %v2084_v56  ;;  %v2229_v35 = vsel %vm1068_vm3, %v2227_v19, %v2228_v59  ;;  %v1506_v21 = vmax.f32 %v1410_v27, %v3220_v26 }
  0xfc   :  { %v1601_v46 = vmax.f32 %v1505_v18, %v1553_v52  ;;  %v1507_v48 = vmax.f32 %v1411_v34, %v3224_v58  ;;  %2364 = vst [vmem:[#allocation6 + $0x18] sm:$0xff] %v2332_v60  ;;  %v1508_v54 = vmax.f32 %v1412_v45, %v1460_v7  ;;  %v1413_v29 = vmax.f32 %v3202_v44, %v3220_v26  ;;  %v1370_v7 = vld [vmem:[#allocation2 + $0xa0] sm:$0xf] }
  0xfd   :  { %v2045_v63 = vmax.f32 %v1901_v11, %v1941_v32  ;;  %v1414_v47 = vmax.f32 %v3204_v1, %v3224_v58  ;;  %v1602_v12 = vmax.f32 %v1506_v21, %v3242_v15  ;;  %v1415_v24 = vmax.f32 %v3261_v37, %v3263_v8  ;;  %v1463_v21 = vld [vmem:[#allocation2 + $0xa0] sm:$0xf] }
  0xfe   :  { %v1697_v0 = vmax.f32 %v1601_v46, %v1649_v16  ;;  %v1603_v4 = vmax.f32 %v1507_v48, %v3244_v53  ;;  %v1604_v61 = vmax.f32 %v1508_v54, %v1556_v6  ;;  %v1509_v44 = vmax.f32 %v1413_v29, %v3242_v15  ;;  %v1322_v48 = vld [vmem:[#allocation2 + $0x88] sm:$0xf]  ;;  %v3299_v29 = vld [vmem:[#allocation2 + $0xc0] sm:$0xff]  ;;  %v1559_v6 = vld [vmem:[#allocation2 + $0xb8] sm:$0xf] }
  0xff   :  { %v2189_v5 = vmax.f32 %v2045_v63, %v2085_v23  ;;  %v1510_v20 = vmax.f32 %v1414_v47, %v3244_v53  ;;  %v1698_v33 = vmax.f32 %v1602_v12, %v3276_v40  ;;  %v3301_v47 = vld [vmem:[#allocation2 + $0xc8] sm:$0xff] }
 0x100   :  { %v1798_v1 = vrot.slane %v1697_v0, 1  ;;  %v1942_v28 = vrot.slane %v1697_v0, 2  ;;  %v2086_v38 = vrot.slane %v1697_v0, 3  ;;  %v2230_v57 = vrot.slane %v1697_v0, 4 }
 0x101   :  { %v2333_v39 = vmax.f32 %v2189_v5, %v2229_v35  ;;  %v1699_v36 = vmax.f32 %v1603_v4, %v3278_v25  ;;  %v1700_v9 = vmax.f32 %v1604_v61, %v1652_v51  ;;  %v1800_v31 = vrot.slane %v1698_v33, 1 }
 0x102   :  { %v1799_v10 = vsel %vm633_vm0, %v1796_v17, %v1798_v1  ;;  %v1943_v49 = vsel %vm778_vm1, %v1940_v62, %v1942_v28  ;;  %v2087_v22 = vsel %vm923_vm2, %v2084_v56, %v2086_v38  ;;  %v2231_v30 = vsel %vm1068_vm3, %v2228_v59, %v2230_v57 }
 0x103   :  { %2365 = vst [vmem:[#allocation6 + $0x20] sm:$0xff] %v2333_v39  ;;  %v1902_v14 = vmax.f32 %v3248_v2, %v1799_v10  ;;  %v1801_v27 = vrot.slane %v1699_v36, 1  ;;  %v1944_v34 = vrot.slane %v1698_v33, 2  ;;  %v1945_v45 = vrot.slane %v1699_v36, 2  ;;  %v1655_v10 = vld [vmem:[#allocation2 + $0xd0] sm:$0xf] }
 0x104   :  { %v2088_v41 = vrot.slane %v1698_v33, 3  ;;  %v2089_v13 = vrot.slane %v1699_v36, 3  ;;  %v2232_v43 = vrot.slane %v1698_v33, 4  ;;  %v2233_v17 = vrot.slane %v1699_v36, 4 }
 0x105   :  { %v2046_v50 = vmax.f32 %v1902_v14, %v1943_v49  ;;  %v1802_v3 = vsel %vm633_vm0, %v1800_v31, %v1801_v27  ;;  %v1803_v42 = vrot.slane %v1700_v9, 1  ;;  %v1946_v56 = vsel %vm778_vm1, %v1944_v34, %v1945_v45 }
 0x106   :  { %v1903_v62 = vmax.f32 %v1698_v33, %v1802_v3  ;;  %v2090_v55 = vsel %vm923_vm2, %v2088_v41, %v2089_v13  ;;  %v1947_v19 = vrot.slane %v1700_v9, 2  ;;  %v2234_v2 = vsel %vm1068_vm3, %v2232_v43, %v2233_v17 }
 0x107   :  { %v2190_v59 = vmax.f32 %v2046_v50, %v2087_v22  ;;  %v1804_v18 = vsel %vm633_vm0, %v1801_v27, %v1803_v42  ;;  %v2091_v60 = vrot.slane %v1700_v9, 3  ;;  %v2235_v52 = vrot.slane %v1700_v9, 4  ;;  %v1466_v42 = vld [vmem:[#allocation2 + $0xb8] sm:$0xf] }
 0x108   :  { %v2047_v11 = vmax.f32 %v1903_v62, %v1946_v56  ;;  %v1904_v32 = vmax.f32 %v1699_v36, %v1804_v18  ;;  %v1948_v23 = vsel %vm778_vm1, %v1945_v45, %v1947_v19  ;;  %v1605_v35 = vmax.f32 %v1509_v44, %v3276_v40  ;;  %v3320_v19 = vld [vmem:[#allocation2 + $0xd8] sm:$0xff] }
 0x109   :  { %v2334_v37 = vmax.f32 %v2190_v59, %v2231_v30  ;;  %v2092_v8 = vsel %vm923_vm2, %v2089_v13, %v2091_v60  ;;  %v1606_v46 = vmax.f32 %v1510_v20, %v3278_v25  ;;  %v2236_v54 = vsel %vm1068_vm3, %v2233_v17, %v2235_v52 }
 0x10a   :  { %v2191_v63 = vmax.f32 %v2047_v11, %v2090_v55  ;;  %v2048_v16 = vmax.f32 %v1904_v32, %v1948_v23  ;;  %v1511_v0 = vmax.f32 %v1415_v24, %v1463_v21  ;;  %v1701_v12 = vmax.f32 %v1605_v35, %v3299_v29  ;;  %v3323_v11 = vld [vmem:[#allocation2 + $0xe0] sm:$0xff]  ;;  %v1562_v23 = vld [vmem:[#allocation2 + $0xd0] sm:$0xf] }
 0x10b   :  { %2366 = vst [vmem:[#allocation6 + $0x28] sm:$0xff] %v2334_v37  ;;  %v1702_v4 = vmax.f32 %v1606_v46, %v3301_v47  ;;  %v1416_v5 = vmax.f32 %v3220_v26, %v3242_v15  ;;  %v1417_v61 = vmax.f32 %v3224_v58, %v3244_v53  ;;  %v1418_v28 = vmax.f32 %v1322_v48, %v1370_v7 }
 0x10c   :  { %v2335_v44 = vmax.f32 %v2191_v63, %v2234_v2  ;;  %v2192_v20 = vmax.f32 %v2048_v16, %v2092_v8  ;;  %v1607_v1 = vmax.f32 %v1511_v0, %v1559_v6  ;;  %v1805_v38 = vrot.slane %v1701_v12, 1 }
 0x10d   :  { %v1806_v57 = vrot.slane %v1702_v4, 1  ;;  %v1949_v51 = vrot.slane %v1701_v12, 2  ;;  %v1950_v24 = vrot.slane %v1702_v4, 2  ;;  %v2093_v33 = vrot.slane %v1701_v12, 3 }
 0x10e   :  { %2367 = vst [vmem:[#allocation6 + $0x30] sm:$0xff] %v2335_v44  ;;  %v2336_v39 = vmax.f32 %v2192_v20, %v2236_v54  ;;  %v2094_v36 = vrot.slane %v1702_v4, 3  ;;  %v2237_v9 = vrot.slane %v1701_v12, 4  ;;  %v2238_v22 = vrot.slane %v1702_v4, 4 }
 0x10f   :  { %v1807_v49 = vsel %vm633_vm0, %v1805_v38, %v1806_v57  ;;  %v1951_v26 = vsel %vm778_vm1, %v1949_v51, %v1950_v24  ;;  %v1703_v58 = vmax.f32 %v1607_v1, %v1655_v10  ;;  %v1512_v31 = vmax.f32 %v1416_v5, %v3276_v40  ;;  %v1325_v1 = vld [vmem:[#allocation2 + $0xa0] sm:$0xf] }
 0x110   :  { %2368 = vst [vmem:[#allocation6 + $0x38] sm:$0xff] %v2336_v39  ;;  %v1905_v30 = vmax.f32 %v1701_v12, %v1807_v49  ;;  %v2095_v14 = vsel %vm923_vm2, %v2093_v33, %v2094_v36  ;;  %v1513_v27 = vmax.f32 %v1417_v61, %v3278_v25  ;;  %v2239_v34 = vsel %vm1068_vm3, %v2237_v9, %v2238_v22  ;;  %v1658_v12 = vld [vmem:[#allocation2 + $0xe8] sm:$0xf] }
 0x111   :  { %v1808_v45 = vrot.slane %v1703_v58, 1  ;;  %v1952_v41 = vrot.slane %v1703_v58, 2  ;;  %v2096_v13 = vrot.slane %v1703_v58, 3  ;;  %v2240_v50 = vrot.slane %v1703_v58, 4  ;;  %v1328_v58 = vld [vmem:[#allocation2 + $0xb8] sm:$0xf] }
 0x112   :  { %v2049_v43 = vmax.f32 %v1905_v30, %v1951_v26  ;;  %v1608_v3 = vmax.f32 %v1512_v31, %v3299_v29  ;;  %v1609_v17 = vmax.f32 %v1513_v27, %v3301_v47  ;;  %v1514_v59 = vmax.f32 %v1418_v28, %v1466_v42  ;;  %v1373_v28 = vld [vmem:[#allocation2 + $0xb8] sm:$0xf]  ;;  %v1376_v30 = vld [vmem:[#allocation2 + $0xd0] sm:$0xf] }
 0x113   :  { %v1809_v62 = vsel %vm633_vm0, %v1806_v57, %v1808_v45  ;;  %v1953_v56 = vsel %vm778_vm1, %v1950_v24, %v1952_v41  ;;  %v2097_v55 = vsel %vm923_vm2, %v2094_v36, %v2096_v13  ;;  %v2241_v60 = vsel %vm1068_vm3, %v2238_v22, %v2240_v50  ;;  %v3342_v45 = vld [vmem:[#allocation2 + $0xf0] sm:$0xff]  ;;  %v3346_v42 = vld [vmem:[#allocation2 + $0xf8] sm:$0xff] }
 0x114   :  { %v2193_v2 = vmax.f32 %v2049_v43, %v2095_v14  ;;  %v1906_v18 = vmax.f32 %v1702_v4, %v1809_v62  ;;  %v1704_v32 = vmax.f32 %v1608_v3, %v3320_v19  ;;  %v1705_v52 = vmax.f32 %v1609_v17, %v3323_v11  ;;  %v1469_v41 = vld [vmem:[#allocation2 + $0xd0] sm:$0xf] }
 0x115   :  { %v1610_v37 = vmax.f32 %v1514_v59, %v1562_v23  ;;  %v1419_v8 = vmax.f32 %v3242_v15, %v3276_v40  ;;  %v1420_v35 = vmax.f32 %v3244_v53, %v3278_v25  ;;  %v1421_v22 = vmax.f32 %v1325_v1, %v1373_v28 }
 0x116   :  { %v2337_v46 = vmax.f32 %v2193_v2, %v2239_v34  ;;  %v2050_v21 = vmax.f32 %v1906_v18, %v1953_v56  ;;  %v1810_v48 = vrot.slane %v1704_v32, 1  ;;  %v1954_v7 = vrot.slane %v1704_v32, 2 }
 0x117   :  { %v1811_v63 = vrot.slane %v1705_v52, 1  ;;  %v1955_v16 = vrot.slane %v1705_v52, 2  ;;  %v2098_v54 = vrot.slane %v1704_v32, 3  ;;  %v2099_v0 = vrot.slane %v1705_v52, 3 }
 0x118   :  { %2369 = vst [vmem:[#allocation6 + $0x40] sm:$0xff] %v2337_v46  ;;  %v2194_v4 = vmax.f32 %v2050_v21, %v2097_v55  ;;  %v2242_v6 = vrot.slane %v1704_v32, 4  ;;  %v2243_v5 = vrot.slane %v1705_v52, 4  ;;  %v1706_v61 = vmax.f32 %v1610_v37, %v1658_v12 }
 0x119   :  { %v1812_v44 = vsel %vm633_vm0, %v1810_v48, %v1811_v63  ;;  %v1956_v15 = vsel %vm778_vm1, %v1954_v7, %v1955_v16  ;;  %v2100_v53 = vsel %vm923_vm2, %v2098_v54, %v2099_v0  ;;  %v1515_v20 = vmax.f32 %v1419_v8, %v3299_v29 }
 0x11a   :  { %v2338_v38 = vmax.f32 %v2194_v4, %v2241_v60  ;;  %v1907_v57 = vmax.f32 %v1704_v32, %v1812_v44  ;;  %v2244_v51 = vsel %vm1068_vm3, %v2242_v6, %v2243_v5  ;;  %v1813_v24 = vrot.slane %v1706_v61, 1  ;;  %v1565_v32 = vld [vmem:[#allocation2 + $0xe8] sm:$0xf] }
 0x11b   :  { %v1957_v39 = vrot.slane %v1706_v61, 2  ;;  %v2101_v33 = vrot.slane %v1706_v61, 3  ;;  %v2245_v36 = vrot.slane %v1706_v61, 4  ;;  %v1516_v9 = vmax.f32 %v1420_v35, %v3301_v47  ;;  %v1661_v35 = vld [vmem:[#allocation2 + $0x100] sm:$0xf] }
 0x11c   :  { %2370 = vst [vmem:[#allocation6 + $0x48] sm:$0xff] %v2338_v38  ;;  %v2051_v10 = vmax.f32 %v1907_v57, %v1956_v15  ;;  %v1814_v49 = vsel %vm633_vm0, %v1811_v63, %v1813_v24  ;;  %v1611_v26 = vmax.f32 %v1515_v20, %v3320_v19  ;;  %v1517_v3 = vmax.f32 %v1421_v22, %v1469_v41  ;;  %v1472_v15 = vld [vmem:[#allocation2 + $0xe8] sm:$0xf] }
 0x11d   :  { %v1908_v14 = vmax.f32 %v1705_v52, %v1814_v49  ;;  %v1958_v31 = vsel %vm778_vm1, %v1955_v16, %v1957_v39  ;;  %v2102_v27 = vsel %vm923_vm2, %v2099_v0, %v2101_v33  ;;  %v2246_v34 = vsel %vm1068_vm3, %v2243_v5, %v2245_v36  ;;  %v3364_v39 = vld [vmem:[#allocation2 + $0x108] sm:$0xff]  ;;  %v3366_v33 = vld [vmem:[#allocation2 + $0x110] sm:$0xff] }
 0x11e   :  { %v2195_v13 = vmax.f32 %v2051_v10, %v2100_v53  ;;  %v1612_v43 = vmax.f32 %v1516_v9, %v3323_v11  ;;  %v1707_v50 = vmax.f32 %v1611_v26, %v3342_v45  ;;  %v1422_v62 = vmax.f32 %v3276_v40, %v3299_v29  ;;  %v1568_v26 = vld [vmem:[#allocation2 + $0x100] sm:$0xf] }
 0x11f   :  { %v2052_v17 = vmax.f32 %v1908_v14, %v1958_v31  ;;  %v1423_v56 = vmax.f32 %v3278_v25, %v3301_v47  ;;  %v1424_v55 = vmax.f32 %v1328_v58, %v1376_v30  ;;  %v1613_v8 = vmax.f32 %v1517_v3, %v1565_v32  ;;  %v1379_v32 = vld [vmem:[#allocation2 + $0xe8] sm:$0xf] }
 0x120   :  { %v2339_v59 = vmax.f32 %v2195_v13, %v2244_v51  ;;  %v1708_v2 = vmax.f32 %v1612_v43, %v3346_v42  ;;  %v1815_v18 = vrot.slane %v1707_v50, 1  ;;  %v1959_v60 = vrot.slane %v1707_v50, 2 }
 0x121   :  { %v2196_v23 = vmax.f32 %v2052_v17, %v2102_v27  ;;  %v2103_v52 = vrot.slane %v1707_v50, 3  ;;  %v2247_v37 = vrot.slane %v1707_v50, 4  ;;  %v1709_v63 = vmax.f32 %v1613_v8, %v1661_v35 }
 0x122   :  { %2371 = vst [vmem:[#allocation6 + $0x50] sm:$0xff] %v2339_v59  ;;  %v1816_v46 = vrot.slane %v1708_v2, 1  ;;  %v1960_v21 = vrot.slane %v1708_v2, 2  ;;  %v2104_v48 = vrot.slane %v1708_v2, 3  ;;  %v2248_v40 = vrot.slane %v1708_v2, 4 }
 0x123   :  { %v2340_v7 = vmax.f32 %v2196_v23, %v2246_v34  ;;  %v1518_v25 = vmax.f32 %v1422_v62, %v3320_v19  ;;  %v1519_v16 = vmax.f32 %v1423_v56, %v3323_v11  ;;  %v1818_v5 = vrot.slane %v1709_v63, 1  ;;  %v1664_v59 = vld [vmem:[#allocation2 + $0x118] sm:$0xf] }
 0x124   :  { %v1817_v54 = vsel %vm633_vm0, %v1815_v18, %v1816_v46  ;;  %v1961_v0 = vsel %vm778_vm1, %v1959_v60, %v1960_v21  ;;  %v2105_v12 = vsel %vm923_vm2, %v2103_v52, %v2104_v48  ;;  %v2249_v4 = vsel %vm1068_vm3, %v2247_v37, %v2248_v40  ;;  %v1331_v60 = vld [vmem:[#allocation2 + $0xd0] sm:$0xf] }
 0x125   :  { %2372 = vst [vmem:[#allocation6 + $0x58] sm:$0xff] %v2340_v7  ;;  %v1909_v6 = vmax.f32 %v1707_v50, %v1817_v54  ;;  %v1962_v61 = vrot.slane %v1709_v63, 2  ;;  %v2106_v44 = vrot.slane %v1709_v63, 3  ;;  %v2250_v53 = vrot.slane %v1709_v63, 4 }
 0x126   :  { %v1614_v20 = vmax.f32 %v1518_v25, %v3342_v45  ;;  %v1615_v1 = vmax.f32 %v1519_v16, %v3346_v42  ;;  %v1520_v28 = vmax.f32 %v1424_v55, %v1472_v15  ;;  %v1819_v57 = vsel %vm633_vm0, %v1816_v46, %v1818_v5 }
 0x127   :  { %v2053_v38 = vmax.f32 %v1909_v6, %v1961_v0  ;;  %v1963_v51 = vsel %vm778_vm1, %v1960_v21, %v1962_v61  ;;  %v2107_v24 = vsel %vm923_vm2, %v2104_v48, %v2106_v44  ;;  %v1910_v36 = vmax.f32 %v1708_v2, %v1819_v57  ;;  %v3388_v6 = vld [vmem:[#allocation2 + $0x128] sm:$0xff] }
 0x128   :  { %v2251_v9 = vsel %vm1068_vm3, %v2248_v40, %v2250_v53  ;;  %v1710_v10 = vmax.f32 %v1614_v20, %v3364_v39  ;;  %v1711_v49 = vmax.f32 %v1615_v1, %v3366_v33  ;;  %v1616_v58 = vmax.f32 %v1520_v28, %v1568_v26  ;;  %v1475_v53 = vld [vmem:[#allocation2 + $0x100] sm:$0xf] }
 0x129   :  { %v2197_v22 = vmax.f32 %v2053_v38, %v2105_v12  ;;  %v1425_v30 = vmax.f32 %v3299_v29, %v3320_v19  ;;  %v1426_v14 = vmax.f32 %v3301_v47, %v3323_v11  ;;  %v2054_v31 = vmax.f32 %v1910_v36, %v1963_v51 }
 0x12a   :  { %v1820_v27 = vrot.slane %v1710_v10, 1  ;;  %v1821_v34 = vrot.slane %v1711_v49, 1  ;;  %v1964_v41 = vrot.slane %v1710_v10, 2  ;;  %v1965_v43 = vrot.slane %v1711_v49, 2 }
 0x12b   :  { %v2341_v13 = vmax.f32 %v2197_v22, %v2249_v4  ;;  %v2108_v50 = vrot.slane %v1710_v10, 3  ;;  %v2109_v3 = vrot.slane %v1711_v49, 3  ;;  %v2198_v17 = vmax.f32 %v2054_v31, %v2107_v24  ;;  %v3386_v4 = vld [vmem:[#allocation2 + $0x120] sm:$0xff] }
 0x12c   :  { %v1822_v62 = vsel %vm633_vm0, %v1820_v27, %v1821_v34  ;;  %v2252_v56 = vrot.slane %v1710_v10, 4  ;;  %v2253_v55 = vrot.slane %v1711_v49, 4  ;;  %v1966_v29 = vsel %vm778_vm1, %v1964_v41, %v1965_v43  ;;  %v1334_v27 = vld [vmem:[#allocation2 + $0xe8] sm:$0xf] }
 0x12d   :  { %2373 = vst [vmem:[#allocation6 + $0x60] sm:$0xff] %v2341_v13  ;;  %v1911_v2 = vmax.f32 %v1710_v10, %v1822_v62  ;;  %v2110_v47 = vsel %vm923_vm2, %v2108_v50, %v2109_v3  ;;  %v1712_v18 = vmax.f32 %v1616_v58, %v1664_v59  ;;  %v2342_v23 = vmax.f32 %v2198_v17, %v2251_v9  ;;  %v1571_v9 = vld [vmem:[#allocation2 + $0x118] sm:$0xf]  ;;  %v1667_v13 = vld [vmem:[#allocation2 + $0x130] sm:$0xf] }
 0x12e   :  { %v2254_v52 = vsel %vm1068_vm3, %v2252_v56, %v2253_v55  ;;  %v1521_v37 = vmax.f32 %v1425_v30, %v3342_v45  ;;  %v1522_v8 = vmax.f32 %v1426_v14, %v3346_v42  ;;  %v1427_v25 = vmax.f32 %v1331_v60, %v1379_v32 }
 0x12f   :  { %v2055_v35 = vmax.f32 %v1911_v2, %v1966_v29  ;;  %v1823_v46 = vrot.slane %v1712_v18, 1  ;;  %v1967_v21 = vrot.slane %v1712_v18, 2  ;;  %v2111_v48 = vrot.slane %v1712_v18, 3  ;;  %2374 = vst [vmem:[#allocation6 + $0x68] sm:$0xff] %v2342_v23  ;;  %v1478_v2 = vld [vmem:[#allocation2 + $0x118] sm:$0xf] }
 0x130   :  { %v2255_v40 = vrot.slane %v1712_v18, 4  ;;  %v1617_v7 = vmax.f32 %v1521_v37, %v3364_v39  ;;  %v1618_v63 = vmax.f32 %v1522_v8, %v3366_v33  ;;  %v1523_v1 = vmax.f32 %v1427_v25, %v1475_v53  ;;  %v3406_v23 = vld [vmem:[#allocation2 + $0x138] sm:$0xff] }
 0x131   :  { %v2199_v16 = vmax.f32 %v2055_v35, %v2110_v47  ;;  %v1824_v54 = vsel %vm633_vm0, %v1821_v34, %v1823_v46  ;;  %v1968_v0 = vsel %vm778_vm1, %v1965_v43, %v1967_v21  ;;  %v2112_v12 = vsel %vm923_vm2, %v2109_v3, %v2111_v48 }
 0x132   :  { %v1912_v5 = vmax.f32 %v1711_v49, %v1824_v54  ;;  %v2256_v61 = vsel %vm1068_vm3, %v2253_v55, %v2255_v40  ;;  %v1713_v44 = vmax.f32 %v1617_v7, %v3386_v4  ;;  %v1714_v15 = vmax.f32 %v1618_v63, %v3388_v6  ;;  %v3414_v40 = vld [vmem:[#allocation2 + $0x140] sm:$0xff]  ;;  %v1574_v54 = vld [vmem:[#allocation2 + $0x130] sm:$0xf] }
 0x133   :  { %v2343_v20 = vmax.f32 %v2199_v16, %v2254_v52  ;;  %v1428_v28 = vmax.f32 %v3320_v19, %v3342_v45  ;;  %v1429_v38 = vmax.f32 %v3323_v11, %v3346_v42  ;;  %v1619_v31 = vmax.f32 %v1523_v1, %v1571_v9  ;;  %v1382_v19 = vld [vmem:[#allocation2 + $0x100] sm:$0xf] }
 0x134   :  { %v2056_v57 = vmax.f32 %v1912_v5, %v1968_v0  ;;  %v1825_v51 = vrot.slane %v1713_v44, 1  ;;  %v1826_v24 = vrot.slane %v1714_v15, 1  ;;  %v1969_v36 = vrot.slane %v1713_v44, 2 }
 0x135   :  { %2375 = vst [vmem:[#allocation6 + $0x70] sm:$0xff] %v2343_v20  ;;  %v1970_v10 = vrot.slane %v1714_v15, 2  ;;  %v2113_v49 = vrot.slane %v1713_v44, 3  ;;  %v2114_v26 = vrot.slane %v1714_v15, 3  ;;  %v2257_v22 = vrot.slane %v1713_v44, 4 }
 0x136   :  { %v2200_v58 = vmax.f32 %v2056_v57, %v2112_v12  ;;  %v1827_v30 = vsel %vm633_vm0, %v1825_v51, %v1826_v24  ;;  %v2258_v14 = vrot.slane %v1714_v15, 4  ;;  %v1524_v43 = vmax.f32 %v1428_v28, %v3364_v39  ;;  %v1670_v28 = vld [vmem:[#allocation2 + $0x148] sm:$0xf] }
 0x137   :  { %v1913_v34 = vmax.f32 %v1713_v44, %v1827_v30  ;;  %v1971_v11 = vsel %vm778_vm1, %v1969_v36, %v1970_v10  ;;  %v2115_v41 = vsel %vm923_vm2, %v2113_v49, %v2114_v26  ;;  %v1715_v17 = vmax.f32 %v1619_v31, %v1667_v13 }
 0x138   :  { %v2344_v50 = vmax.f32 %v2200_v58, %v2256_v61  ;;  %v2259_v3 = vsel %vm1068_vm3, %v2257_v22, %v2258_v14  ;;  %v1525_v62 = vmax.f32 %v1429_v38, %v3366_v33  ;;  %v1620_v55 = vmax.f32 %v1524_v43, %v3386_v4  ;;  %v1340_v43 = vld [vmem:[#allocation2 + $0x118] sm:$0xf] }
 0x139   :  { %v2057_v56 = vmax.f32 %v1913_v34, %v1971_v11  ;;  %v1430_v59 = vmax.f32 %v1334_v27, %v1382_v19  ;;  %v1431_v29 = vmax.f32 %v3342_v45, %v3364_v39  ;;  %v1828_v47 = vrot.slane %v1715_v17, 1  ;;  %v1385_v19 = vld [vmem:[#allocation2 + $0x118] sm:$0xf] }
 0x13a   :  { %2376 = vst [vmem:[#allocation6 + $0x78] sm:$0xff] %v2344_v50  ;;  %v1972_v18 = vrot.slane %v1715_v17, 2  ;;  %v2116_v60 = vrot.slane %v1715_v17, 3  ;;  %v2260_v32 = vrot.slane %v1715_v17, 4  ;;  %v1621_v37 = vmax.f32 %v1525_v62, %v3388_v6  ;;  %v1388_v50 = vld [vmem:[#allocation2 + $0x130] sm:$0xf] }
 0x13b   :  { %v2201_v52 = vmax.f32 %v2057_v56, %v2115_v41  ;;  %v1716_v8 = vmax.f32 %v1620_v55, %v3406_v23  ;;  %v1526_v35 = vmax.f32 %v1430_v59, %v1478_v2  ;;  %v1829_v46 = vsel %vm633_vm0, %v1826_v24, %v1828_v47  ;;  %v3431_v55 = vld [vmem:[#allocation2 + $0x150] sm:$0xff]  ;;  %v3433_v2 = vld [vmem:[#allocation2 + $0x158] sm:$0xff] }
 0x13c   :  { %v1973_v21 = vsel %vm778_vm1, %v1970_v10, %v1972_v18  ;;  %v2117_v48 = vsel %vm923_vm2, %v2114_v26, %v2116_v60  ;;  %v2261_v45 = vsel %vm1068_vm3, %v2258_v14, %v2260_v32  ;;  %v1914_v63 = vmax.f32 %v1714_v15, %v1829_v46 }
 0x13d   :  { %v2345_v7 = vmax.f32 %v2201_v52, %v2259_v3  ;;  %v1717_v25 = vmax.f32 %v1621_v37, %v3414_v40  ;;  %v1830_v16 = vrot.slane %v1716_v8, 1  ;;  %v1974_v0 = vrot.slane %v1716_v8, 2 }
 0x13e   :  { %v2118_v12 = vrot.slane %v1716_v8, 3  ;;  %v2262_v5 = vrot.slane %v1716_v8, 4  ;;  %v1622_v61 = vmax.f32 %v1526_v35, %v1574_v54  ;;  %v2058_v44 = vmax.f32 %v1914_v63, %v1973_v21 }
 0x13f   :  { %2377 = vst [vmem:[#allocation6 + $0x80] sm:$0xff] %v2345_v7  ;;  %v1831_v53 = vrot.slane %v1717_v25, 1  ;;  %v1975_v20 = vrot.slane %v1717_v25, 2  ;;  %v2119_v1 = vrot.slane %v1717_v25, 3  ;;  %v2263_v38 = vrot.slane %v1717_v25, 4 }
 0x140   :  { %v1718_v57 = vmax.f32 %v1622_v61, %v1670_v28  ;;  %v1432_v51 = vmax.f32 %v3346_v42, %v3366_v33  ;;  %v1527_v15 = vmax.f32 %v1431_v29, %v3386_v4  ;;  %v2202_v24 = vmax.f32 %v2058_v44, %v2117_v48  ;;  %v1337_v42 = vld [vmem:[#allocation2 + $0x100] sm:$0xf]  ;;  %v1577_v61 = vld [vmem:[#allocation2 + $0x148] sm:$0xf] }
 0x141   :  { %v1832_v36 = vsel %vm633_vm0, %v1830_v16, %v1831_v53  ;;  %v1976_v9 = vsel %vm778_vm1, %v1974_v0, %v1975_v20  ;;  %v2120_v10 = vsel %vm923_vm2, %v2118_v12, %v2119_v1  ;;  %v2264_v26 = vsel %vm1068_vm3, %v2262_v5, %v2263_v38  ;;  %v1484_v28 = vld [vmem:[#allocation2 + $0x148] sm:$0xf] }
 0x142   :  { %v1915_v49 = vmax.f32 %v1716_v8, %v1832_v36  ;;  %v1833_v22 = vrot.slane %v1718_v57, 1  ;;  %v1977_v58 = vrot.slane %v1718_v57, 2  ;;  %v2346_v30 = vmax.f32 %v2202_v24, %v2261_v45 }
 0x143   :  { %v2121_v14 = vrot.slane %v1718_v57, 3  ;;  %v2265_v31 = vrot.slane %v1718_v57, 4  ;;  %v1528_v27 = vmax.f32 %v1432_v51, %v3388_v6  ;;  %v1623_v13 = vmax.f32 %v1527_v15, %v3406_v23  ;;  %v3454_v57 = vld [vmem:[#allocation2 + $0x148] sm:$0xf]  ;;  %v1673_v51 = vld [vmem:[#allocation2 + $0x160] sm:$0xf] }
 0x144   :  { %v2059_v34 = vmax.f32 %v1915_v49, %v1976_v9  ;;  %v1834_v11 = vsel %vm633_vm0, %v1831_v53, %v1833_v22  ;;  %v1978_v41 = vsel %vm778_vm1, %v1975_v20, %v1977_v58  ;;  %2378 = vst [vmem:[#allocation6 + $0x88] sm:$0xff] %v2346_v30  ;;  %v1433_v47 = vmax.f32 %v1337_v42, %v1385_v19  ;;  %v3463_v58 = vld [vmem:[#allocation2 + $0x168] sm:$0xff]  ;;  %v1580_v30 = vld [vmem:[#allocation2 + $0x160] sm:$0xf] }
 0x145   :  { %v1916_v3 = vmax.f32 %v1717_v25, %v1834_v11  ;;  %v2122_v17 = vsel %vm923_vm2, %v2119_v1, %v2121_v14  ;;  %v2266_v62 = vsel %vm1068_vm3, %v2263_v38, %v2265_v31  ;;  %v1624_v56 = vmax.f32 %v1528_v27, %v3414_v40  ;;  %v3452_v38 = vld [vmem:[#allocation2 + $0x130] sm:$0xf] }
 0x146   :  { %v2203_v59 = vmax.f32 %v2059_v34, %v2120_v10  ;;  %v1719_v29 = vmax.f32 %v1623_v13, %v3431_v55  ;;  %v1434_v18 = vmax.f32 %v3364_v39, %v3386_v4  ;;  %v1435_v52 = vmax.f32 %v3366_v33, %v3388_v6  ;;  %v1481_v39 = vld [vmem:[#allocation2 + $0x130] sm:$0xf] }
 0x147   :  { %v2060_v60 = vmax.f32 %v1916_v3, %v1978_v41  ;;  %v3439_v32 = vmax.f32 %v1624_v56, %v3433_v2  ;;  %v1436_v37 = vmax.f32 %v1340_v43, %v1388_v50  ;;  %v1529_v54 = vmax.f32 %v1433_v47, %v1481_v39  ;;  %v3469_v11 = vld [vmem:[#allocation2 + $0x170] sm:$0xff] }
 0x148   :  { %v2347_v8 = vmax.f32 %v2203_v59, %v2264_v26  ;;  %v1835_v35 = vrot.slane %v1719_v29, 1  ;;  %v1979_v46 = vrot.slane %v1719_v29, 2  ;;  %v2123_v21 = vrot.slane %v1719_v29, 3 }
 0x149   :  { %v2204_v48 = vmax.f32 %v2060_v60, %v2122_v17  ;;  %v1836_v45 = vrot.slane %v3439_v32, 1  ;;  %v1980_v7 = vrot.slane %v3439_v32, 2  ;;  %v2124_v63 = vrot.slane %v3439_v32, 3  ;;  %v1676_v60 = vld [vmem:[#allocation2 + $0x178] sm:$0xf] }
 0x14a   :  { %2379 = vst [vmem:[#allocation6 + $0x90] sm:$0xff] %v2347_v8  ;;  %v2267_v25 = vrot.slane %v1719_v29, 4  ;;  %v2268_v16 = vrot.slane %v3439_v32, 4  ;;  %v1530_v33 = vmax.f32 %v1434_v18, %v3406_v23  ;;  %v1625_v20 = vmax.f32 %v1529_v54, %v1577_v61 }
 0x14b   :  { %v2348_v0 = vmax.f32 %v2204_v48, %v2266_v62  ;;  %v1837_v12 = vsel %vm633_vm0, %v1835_v35, %v1836_v45  ;;  %v1981_v5 = vsel %vm778_vm1, %v1979_v46, %v1980_v7  ;;  %v2125_v53 = vsel %vm923_vm2, %v2123_v21, %v2124_v63 }
 0x14c   :  { %v1917_v44 = vmax.f32 %v1719_v29, %v1837_v12  ;;  %v1531_v1 = vmax.f32 %v1435_v52, %v3414_v40  ;;  %v1626_v15 = vmax.f32 %v1530_v33, %v3431_v55  ;;  %v1532_v24 = vmax.f32 %v1436_v37, %v1484_v28  ;;  %v3488_v12 = vld [vmem:[#allocation2 + $0x180] sm:$0xff] }
 0x14d   :  { %2380 = vst [vmem:[#allocation6 + $0x98] sm:$0xff] %v2348_v0  ;;  %v1437_v36 = vmax.f32 %v3386_v4, %v3406_v23  ;;  %v1438_v9 = vmax.f32 %v3388_v6, %v3414_v40  ;;  %v2269_v49 = vsel %vm1068_vm3, %v2267_v25, %v2268_v16  ;;  %v1721_v26 = vmax.f32 %v1625_v20, %v1673_v51 }
 0x14e   :  { %v2061_v10 = vmax.f32 %v1917_v44, %v1981_v5  ;;  %v1627_v22 = vmax.f32 %v1531_v1, %v3433_v2  ;;  %v1722_v14 = vmax.f32 %v1626_v15, %v3463_v58  ;;  %v1628_v31 = vmax.f32 %v1532_v24, %v1580_v30 }
 0x14f   :  { %v1533_v27 = vmax.f32 %v1437_v36, %v3431_v55  ;;  %v1439_v4 = vmax.f32 %v3452_v38, %v3454_v57  ;;  %v1838_v19 = vrot.slane %v1721_v26, 1  ;;  %v1982_v6 = vrot.slane %v1721_v26, 2  ;;  %v3495_v38 = vld [vmem:[#allocation2 + $0x188] sm:$0xff] }
 0x150   :  { %v2205_v42 = vmax.f32 %v2061_v10, %v2125_v53  ;;  %v2126_v34 = vrot.slane %v1721_v26, 3  ;;  %v2270_v41 = vrot.slane %v1721_v26, 4  ;;  %v3472_v13 = vmax.f32 %v1627_v22, %v3469_v11 }
 0x151   :  { %v1840_v43 = vrot.slane %v1722_v14, 1  ;;  %v1534_v50 = vmax.f32 %v1438_v9, %v3433_v2  ;;  %v1839_v17 = vsel %vm633_vm0, %v1836_v45, %v1838_v19  ;;  %v1983_v62 = vsel %vm778_vm1, %v1980_v7, %v1982_v6 }
 0x152   :  { %v2349_v3 = vmax.f32 %v2205_v42, %v2269_v49  ;;  %v1984_v56 = vrot.slane %v1722_v14, 2  ;;  %v1918_v59 = vmax.f32 %v3439_v32, %v1839_v17  ;;  %v2127_v29 = vsel %vm923_vm2, %v2124_v63, %v2126_v34  ;;  %v1346_v34 = vld [vmem:[#allocation2 + $0x148] sm:$0xf] }
 0x153   :  { %v1841_v47 = vrot.slane %v3472_v13, 1  ;;  %v1985_v18 = vrot.slane %v3472_v13, 2  ;;  %v2128_v52 = vrot.slane %v1722_v14, 3  ;;  %v2129_v37 = vrot.slane %v3472_v13, 3 }
 0x154   :  { %2381 = vst [vmem:[#allocation6 + $0xa0] sm:$0xff] %v2349_v3  ;;  %v2272_v8 = vrot.slane %v1722_v14, 4  ;;  %v2273_v35 = vrot.slane %v3472_v13, 4  ;;  %v2062_v46 = vmax.f32 %v1918_v59, %v1983_v62  ;;  %v2271_v21 = vsel %vm1068_vm3, %v2268_v16, %v2270_v41  ;;  %v1394_v41 = vld [vmem:[#allocation2 + $0x160] sm:$0xf] }
 0x155   :  { %v1842_v48 = vsel %vm633_vm0, %v1840_v43, %v1841_v47  ;;  %v1724_v32 = vmax.f32 %v1628_v31, %v1676_v60  ;;  %v1986_v7 = vsel %vm778_vm1, %v1984_v56, %v1985_v18  ;;  %v2130_v63 = vsel %vm923_vm2, %v2128_v52, %v2129_v37  ;;  %v1487_v31 = vld [vmem:[#allocation2 + $0x160] sm:$0xf] }
 0x156   :  { %v1919_v45 = vmax.f32 %v1722_v14, %v1842_v48  ;;  %v1629_v39 = vmax.f32 %v1533_v27, %v3463_v58  ;;  %v2206_v25 = vmax.f32 %v2062_v46, %v2127_v29  ;;  %v2274_v61 = vsel %vm1068_vm3, %v2272_v8, %v2273_v35  ;;  %v1679_v29 = vld [vmem:[#allocation2 + $0x190] sm:$0xf]  ;;  %v3517_v46 = vld [vmem:[#allocation2 + $0x160] sm:$0xf] }
 0x157   :  { %v1843_v54 = vrot.slane %v1724_v32, 1  ;;  %v1987_v33 = vrot.slane %v1724_v32, 2  ;;  %v2131_v0 = vrot.slane %v1724_v32, 3  ;;  %v1630_v16 = vmax.f32 %v1534_v50, %v3469_v11  ;;  %v1583_v50 = vld [vmem:[#allocation2 + $0x178] sm:$0xf] }
 0x158   :  { %v2063_v5 = vmax.f32 %v1919_v45, %v1986_v7  ;;  %v1725_v44 = vmax.f32 %v1629_v39, %v3488_v12  ;;  %v2350_v53 = vmax.f32 %v2206_v25, %v2271_v21  ;;  %v2275_v28 = vrot.slane %v1724_v32, 4  ;;  %v3525_v25 = vld [vmem:[#allocation2 + $0x198] sm:$0xff] }
 0x159   :  { %v1844_v20 = vsel %vm633_vm0, %v1841_v47, %v1843_v54  ;;  %v1988_v1 = vsel %vm778_vm1, %v1985_v18, %v1987_v33  ;;  %v2132_v15 = vsel %vm923_vm2, %v2129_v37, %v2131_v0  ;;  %v3500_v24 = vmax.f32 %v1630_v16, %v3495_v38  ;;  %v3527_v54 = vld [vmem:[#allocation2 + $0x1a0] sm:$0xff]  ;;  %v1586_v16 = vld [vmem:[#allocation2 + $0x190] sm:$0xf] }
 0x15a   :  { %v2207_v57 = vmax.f32 %v2063_v5, %v2130_v63  ;;  %v1920_v51 = vmax.f32 %v3472_v13, %v1844_v20  ;;  %2382 = vst [vmem:[#allocation6 + $0xa8] sm:$0xff] %v2350_v53  ;;  %v1845_v36 = vrot.slane %v1725_v44, 1  ;;  %v1989_v9 = vrot.slane %v1725_v44, 2 }
 0x15b   :  { %v2133_v10 = vrot.slane %v1725_v44, 3  ;;  %v2277_v49 = vrot.slane %v1725_v44, 4  ;;  %v1846_v30 = vrot.slane %v3500_v24, 1  ;;  %v1990_v14 = vrot.slane %v3500_v24, 2 }
 0x15c   :  { %v2351_v26 = vmax.f32 %v2207_v57, %v2274_v61  ;;  %v2064_v22 = vmax.f32 %v1920_v51, %v1988_v1  ;;  %v2134_v27 = vrot.slane %v3500_v24, 3  ;;  %v2278_v42 = vrot.slane %v3500_v24, 4 }
 0x15d   :  { %v1535_v19 = vmax.f32 %v1439_v4, %v1487_v31  ;;  %v1440_v6 = vmax.f32 %v3406_v23, %v3431_v55  ;;  %v1847_v43 = vsel %vm633_vm0, %v1845_v36, %v1846_v30  ;;  %v1441_v3 = vmax.f32 %v3414_v40, %v3433_v2  ;;  %v1490_v40 = vld [vmem:[#allocation2 + $0x178] sm:$0xf] }
 0x15e   :  { %2383 = vst [vmem:[#allocation6 + $0xb0] sm:$0xff] %v2351_v26  ;;  %v2208_v13 = vmax.f32 %v2064_v22, %v2132_v15  ;;  %v2276_v17 = vsel %vm1068_vm3, %v2273_v35, %v2275_v28  ;;  %v1921_v62 = vmax.f32 %v1725_v44, %v1847_v43  ;;  %v1991_v56 = vsel %vm778_vm1, %v1989_v9, %v1990_v14  ;;  %v3519_v35 = vld [vmem:[#allocation2 + $0x178] sm:$0xf] }
 0x15f   :  { %v1631_v59 = vmax.f32 %v1535_v19, %v1583_v50  ;;  %v1536_v23 = vmax.f32 %v1440_v6, %v3463_v58  ;;  %v1537_v47 = vmax.f32 %v1441_v3, %v3469_v11  ;;  %v1442_v18 = vmax.f32 %v1346_v34, %v1394_v41  ;;  %v1682_v19 = vld [vmem:[#allocation2 + $0x1a8] sm:$0xf] }
 0x160   :  { %v2352_v4 = vmax.f32 %v2208_v13, %v2276_v17  ;;  %v2065_v60 = vmax.f32 %v1921_v62, %v1991_v56  ;;  %v2135_v52 = vsel %vm923_vm2, %v2133_v10, %v2134_v27  ;;  %v2279_v37 = vsel %vm1068_vm3, %v2277_v49, %v2278_v42 }
 0x161   :  { %v1727_v8 = vmax.f32 %v1631_v59, %v1679_v29  ;;  %v1632_v21 = vmax.f32 %v1536_v23, %v3488_v12  ;;  %v1633_v48 = vmax.f32 %v1537_v47, %v3495_v38  ;;  %v1538_v32 = vmax.f32 %v1442_v18, %v1490_v40  ;;  %v1493_v40 = vld [vmem:[#allocation2 + $0x190] sm:$0xf] }
 0x162   :  { %2384 = vst [vmem:[#allocation6 + $0xb8] sm:$0xff] %v2352_v4  ;;  %v1443_v45 = vmax.f32 %v3431_v55, %v3463_v58  ;;  %v2209_v7 = vmax.f32 %v2065_v60, %v2135_v52  ;;  %v1444_v33 = vmax.f32 %v3433_v2, %v3469_v11  ;;  %v1445_v44 = vmax.f32 %v3517_v46, %v3519_v35  ;;  %v2419_v52 = vld [vmem:[#allocation2] sm:$0xff] }
 0x163   :  { %v1848_v63 = vrot.slane %v1727_v8, 1  ;;  %v1992_v39 = vrot.slane %v1727_v8, 2  ;;  %v2136_v0 = vrot.slane %v1727_v8, 3  ;;  %v1728_v5 = vmax.f32 %v1632_v21, %v3525_v25 }
 0x164   :  { %v1729_v61 = vmax.f32 %v1633_v48, %v3527_v54  ;;  %v2353_v55 = vmax.f32 %v2209_v7, %v2279_v37  ;;  %v2280_v20 = vrot.slane %v1727_v8, 4  ;;  %v1634_v1 = vmax.f32 %v1538_v32, %v1586_v16 }
 0x165   :  { %v1849_v53 = vsel %vm633_vm0, %v1846_v30, %v1848_v63  ;;  %v1993_v57 = vsel %vm778_vm1, %v1990_v14, %v1992_v39  ;;  %v1850_v51 = vrot.slane %v1728_v5, 1  ;;  %v1994_v15 = vrot.slane %v1728_v5, 2 }
 0x166   :  { %v1922_v28 = vmax.f32 %v3500_v24, %v1849_v53  ;;  %v1851_v2 = vrot.slane %v1729_v61, 1  ;;  %2385 = vst [vmem:[#allocation6 + $0xc0] sm:$0xff] %v2353_v55  ;;  %v1995_v36 = vrot.slane %v1729_v61, 2  ;;  %v2138_v9 = vrot.slane %v1728_v5, 3 }
 0x167   :  { %v2139_v10 = vrot.slane %v1729_v61, 3  ;;  %v2282_v22 = vrot.slane %v1728_v5, 4  ;;  %v2283_v31 = vrot.slane %v1729_v61, 4  ;;  %v2137_v30 = vsel %vm923_vm2, %v2134_v27, %v2136_v0 }
 0x168   :  { %v2066_v49 = vmax.f32 %v1922_v28, %v1993_v57  ;;  %v1852_v26 = vsel %vm633_vm0, %v1850_v51, %v1851_v2  ;;  %v2281_v6 = vsel %vm1068_vm3, %v2278_v42, %v2280_v20  ;;  %v1730_v34 = vmax.f32 %v1634_v1, %v1682_v19  ;;  %v1685_v1 = vld [vmem:[#allocation2 + $0x1c0] sm:$0xf] }
 0x169   :  { %v1923_v24 = vmax.f32 %v1728_v5, %v1852_v26  ;;  %v1996_v41 = vsel %vm778_vm1, %v1994_v15, %v1995_v36  ;;  %v1539_v13 = vmax.f32 %v1443_v45, %v3488_v12  ;;  %v1540_v43 = vmax.f32 %v1444_v33, %v3495_v38 }
 0x16a   :  { %v2210_v14 = vmax.f32 %v2066_v49, %v2137_v30  ;;  %v2140_v3 = vsel %vm923_vm2, %v2138_v9, %v2139_v10  ;;  %v1853_v17 = vrot.slane %v1730_v34, 1  ;;  %v1997_v62 = vrot.slane %v1730_v34, 2 }
 0x16b   :  { %v2067_v50 = vmax.f32 %v1923_v24, %v1996_v41  ;;  %v2284_v59 = vsel %vm1068_vm3, %v2282_v22, %v2283_v31  ;;  %v1635_v27 = vmax.f32 %v1539_v13, %v3525_v25  ;;  %v1636_v42 = vmax.f32 %v1540_v43, %v3527_v54 }
 0x16c   :  { %v2354_v56 = vmax.f32 %v2210_v14, %v2281_v6  ;;  %v1854_v29 = vsel %vm633_vm0, %v1851_v2, %v1853_v17  ;;  %v2141_v23 = vrot.slane %v1730_v34, 3  ;;  %v2285_v47 = vrot.slane %v1730_v34, 4 }
 0x16d   :  { %v2211_v4 = vmax.f32 %v2067_v50, %v2140_v3  ;;  %v1924_v18 = vmax.f32 %v1729_v61, %v1854_v29  ;;  %v1998_v60 = vsel %vm778_vm1, %v1995_v36, %v1997_v62  ;;  %v1731_v37 = vmax.f32 %v1635_v27, %v2419_v52  ;;  %v1589_v61 = vld [vmem:[#allocation2 + $0x1a8] sm:$0xf]  ;;  %v1688_v3 = vld [vmem:[#allocation2 + $0x1d8] sm:$0xf] }
 0x16e   :  { %2386 = vst [vmem:[#allocation6 + $0xc8] sm:$0xff] %v2354_v56  ;;  %v3550_v8 = vmax.f32 %v1636_v42, %v2419_v52  ;;  %v1541_v35 = vmax.f32 %v1445_v44, %v1493_v40  ;;  %v1446_v21 = vmax.f32 %v3463_v58, %v3488_v12  ;;  %v1447_v48 = vmax.f32 %v3469_v11, %v3495_v38  ;;  %v1352_v38 = vld [vmem:[#allocation2 + $0x178] sm:$0xf]  ;;  %v1400_v44 = vld [vmem:[#allocation2 + $0x190] sm:$0xf] }
 0x16f   :  { %v2355_v46 = vmax.f32 %v2211_v4, %v2284_v59  ;;  %v2068_v32 = vmax.f32 %v1924_v18, %v1998_v60  ;;  %v1855_v45 = vrot.slane %v1731_v37, 1  ;;  %v1999_v63 = vrot.slane %v1731_v37, 2 }
 0x170   :  { %v1856_v7 = vrot.slane %v3550_v8, 1  ;;  %v2142_v39 = vsel %vm923_vm2, %v2139_v10, %v2141_v23  ;;  %v2286_v33 = vsel %vm1068_vm3, %v2283_v31, %v2285_v47  ;;  %v2000_v0 = vrot.slane %v3550_v8, 2  ;;  %v1496_v31 = vld [vmem:[#allocation2 + $0x1a8] sm:$0xf] }
 0x171   :  { %2387 = vst [vmem:[#allocation6 + $0xd0] sm:$0xff] %v2355_v46  ;;  %v2143_v5 = vrot.slane %v1731_v37, 3  ;;  %v2212_v16 = vmax.f32 %v2068_v32, %v2142_v39  ;;  %v2144_v12 = vrot.slane %v3550_v8, 3  ;;  %v1637_v11 = vmax.f32 %v1541_v35, %v1589_v61 }
 0x172   :  { %v1857_v58 = vsel %vm633_vm0, %v1855_v45, %v1856_v7  ;;  %v2287_v53 = vrot.slane %v1731_v37, 4  ;;  %v2288_v20 = vrot.slane %v3550_v8, 4  ;;  %v1542_v28 = vmax.f32 %v1446_v21, %v3525_v25  ;;  %v1592_v25 = vld [vmem:[#allocation2 + $0x1c0] sm:$0xf] }
 0x173   :  { %v1925_v55 = vmax.f32 %v1731_v37, %v1857_v58  ;;  %v2356_v57 = vmax.f32 %v2212_v16, %v2286_v33  ;;  %v2001_v51 = vsel %vm778_vm1, %v1999_v63, %v2000_v0  ;;  %v1733_v2 = vmax.f32 %v1637_v11, %v1685_v1 }
 0x174   :  { %v1543_v15 = vmax.f32 %v1447_v48, %v3527_v54  ;;  %v1638_v9 = vmax.f32 %v1542_v28, %v2419_v52  ;;  %v1448_v10 = vmax.f32 %v1352_v38, %v1400_v44  ;;  %v2145_v49 = vsel %vm923_vm2, %v2143_v5, %v2144_v12 }
 0x175   :  { %v2069_v36 = vmax.f32 %v1925_v55, %v2001_v51  ;;  %2388 = vst [vmem:[#allocation6 + $0xd8] sm:$0xff] %v2356_v57  ;;  %v1858_v26 = vrot.slane %v1733_v2, 1  ;;  %v2002_v22 = vrot.slane %v1733_v2, 2  ;;  %v2289_v34 = vsel %vm1068_vm3, %v2287_v53, %v2288_v20 }
 0x176   :  { %v1639_v30 = vmax.f32 %v1543_v15, %v2419_v52  ;;  %v1734_v6 = vmax.f32 %v1638_v9, %v2419_v52  ;;  %v1544_v24 = vmax.f32 %v1448_v10, %v1496_v31  ;;  %v2146_v41 = vrot.slane %v1733_v2, 3 }
 0x177   :  { %v2213_v19 = vmax.f32 %v2069_v36, %v2145_v49  ;;  %v1859_v14 = vsel %vm633_vm0, %v1856_v7, %v1858_v26  ;;  %v2003_v17 = vsel %vm778_vm1, %v2000_v0, %v2002_v22  ;;  %v2290_v62 = vrot.slane %v1733_v2, 4 }
 0x178   :  { %v1926_v13 = vmax.f32 %v3550_v8, %v1859_v14  ;;  %v1735_v43 = vmax.f32 %v1639_v30, %v2419_v52  ;;  %v1860_v50 = vrot.slane %v1734_v6, 1  ;;  %v1640_v56 = vmax.f32 %v1544_v24, %v1592_v25 }
 0x179   :  { %v2357_v54 = vmax.f32 %v2213_v19, %v2289_v34  ;;  %v2004_v42 = vrot.slane %v1734_v6, 2  ;;  %v2147_v29 = vsel %vm923_vm2, %v2144_v12, %v2146_v41  ;;  %v2148_v60 = vrot.slane %v1734_v6, 3 }
 0x17a   :  { %v2070_v59 = vmax.f32 %v1926_v13, %v2003_v17  ;;  %v1861_v27 = vrot.slane %v1735_v43, 1  ;;  %v2005_v4 = vrot.slane %v1735_v43, 2  ;;  %v1736_v23 = vmax.f32 %v1640_v56, %v1688_v3 }
 0x17b   :  { %2389 = vst [vmem:[#allocation6 + $0xe0] sm:$0xff] %v2357_v54  ;;  %v2149_v37 = vrot.slane %v1735_v43, 3  ;;  %v2291_v52 = vsel %vm1068_vm3, %v2288_v20, %v2290_v62  ;;  %v2292_v48 = vrot.slane %v1734_v6, 4  ;;  %v2293_v32 = vrot.slane %v1735_v43, 4 }
 0x17c   :  { %v2214_v47 = vmax.f32 %v2070_v59, %v2147_v29  ;;  %v1862_v18 = vsel %vm633_vm0, %v1860_v50, %v1861_v27  ;;  %v1863_v40 = vrot.slane %v1736_v23, 1  ;;  %v2007_v46 = vrot.slane %v1736_v23, 2 }
 0x17d   :  { %v1927_v8 = vmax.f32 %v1734_v6, %v1862_v18  ;;  %v2006_v21 = vsel %vm778_vm1, %v2004_v42, %v2005_v4  ;;  %v2151_v63 = vrot.slane %v1736_v23, 3  ;;  %v2150_v39 = vsel %vm923_vm2, %v2148_v60, %v2149_v37 }
 0x17e   :  { %v2358_v35 = vmax.f32 %v2214_v47, %v2291_v52  ;;  %v1864_v7 = vsel %vm633_vm0, %v1861_v27, %v1863_v40  ;;  %v2008_v5 = vsel %vm778_vm1, %v2005_v4, %v2007_v46  ;;  %v2295_v61 = vrot.slane %v1736_v23, 4 }
 0x17f   :  { %v2071_v45 = vmax.f32 %v1927_v8, %v2006_v21  ;;  %v1928_v33 = vmax.f32 %v1735_v43, %v1864_v7  ;;  %v2294_v16 = vsel %vm1068_vm3, %v2292_v48, %v2293_v32  ;;  %v2152_v11 = vsel %vm923_vm2, %v2149_v37, %v2151_v63 }
 0x180   :  { %2390 = vst [vmem:[#allocation6 + $0xe8] sm:$0xff] %v2358_v35  ;;  %v2296_v44 = vsel %vm1068_vm3, %v2293_v32, %v2295_v61 }
 0x181   :  { %v2215_v0 = vmax.f32 %v2071_v45, %v2150_v39  ;;  %v2072_v58 = vmax.f32 %v1928_v33, %v2008_v5 }
 0x183   :  { %v2359_v12 = vmax.f32 %v2215_v0, %v2294_v16  ;;  %v2216_v38 = vmax.f32 %v2072_v58, %v2152_v11 }
 0x185   :  { %2391 = vst [vmem:[#allocation6 + $0xf0] sm:$0xff] %v2359_v12  ;;  %v2360_v55 = vmax.f32 %v2216_v38, %v2296_v44 }
 0x187   :  { %2392 = vst [vmem:[#allocation6 + $0xf8] sm:$0xff] %v2360_v55 }
 0x188   :  { %2405 = dma.vmem_to_hbm [thread:$0]  %s2398_s13, 4096, %s2400_s16, [#allocation5], %s2473_s11, %s2473_s11, %s2474_s12  }
 0x189   :  { %2470 = dma.done.wait [#allocation5], 4096  }
 0x18a   :  { %2471 = vsyncadd [#allocation5], 4294963200 }
 0x18b   :  { %2410 = vsyncpa [#allocation4], 1 }
 0x18c   :  { %2411 = vsyncpa [#allocation5], 1 }

</bundles_post_ra>
